<compile_context>
chip_gen: v6e
topology: v6e:2x2x1
jax: 0.10.0
libtpu: 0.0.40
codegen_flags: <defaults>
</compile_context>

<pallas_src>
import jax
import jax.numpy as jnp
from jax.experimental import pallas as pl
from jax.experimental.pallas import tpu as pltpu

HIDDEN_SIZE = 64
METADATA_SIZE = 5
NUM_LAYERS = 2            # hard-wired as two explicit LSTM layers below
OUTPUT_SIZE = 1
SEQUENCE_INPUT_SIZE = 3
MAX_BATCH_TILE = 128      # rows per grid step; batch rounded up to a multiple of 8


def hybrid_rnn_kernel(xw0_ref, meta_ref,
                      whh0_ref, wih1_ref, whh1_ref, b1_ref,
                      wm1_ref, bm1_ref, wm2_ref, bm2_ref,
                      wf1h_ref, wf1m_ref, bf1_ref,
                      wf2r_ref, bf2_ref,
                      out_ref):
    T, BB, G = xw0_ref.shape          # G = 4 * H (input projection precomputed in wrapper)
    H = G // 4

    def gates_to_state(gates, c):
        # PyTorch gate order i, f, g, o; 64-lane slices of the 256-wide gate slab.
        i = jax.nn.sigmoid(gates[:, 0 * H:1 * H])
        f = jax.nn.sigmoid(gates[:, 1 * H:2 * H])
        g = jnp.tanh(gates[:, 2 * H:3 * H])
        o = jax.nn.sigmoid(gates[:, 3 * H:4 * H])
        c_new = f * c + i * g
        h_new = o * jnp.tanh(c_new)
        return h_new, c_new

    h1 = jnp.zeros((BB, H), jnp.float32)
    c1 = jnp.zeros((BB, H), jnp.float32)
    h2 = jnp.zeros((BB, H), jnp.float32)
    c2 = jnp.zeros((BB, H), jnp.float32)

    # Hoist the layer-1 bias broadcast out of the unrolled loop (JAX does not CSE it).
    b1b = jnp.broadcast_to(b1_ref[...], (BB, G))

    # T is small and static -> fully unroll (keeps LLO scheduler visibility).
    for t in range(T):
        # layer 0: input projection + bias already in xw0; only the recurrent dot is serial
        gates0 = xw0_ref[t] + jnp.dot(h1.astype(jnp.bfloat16), whh0_ref[...],
                                      preferred_element_type=jnp.float32)
        h1, c1 = gates_to_state(gates0, c1)

        # layer 1: vreg-resident split matmul (no VMEM store/reload of [h1 | h2])
        gates1 = (jnp.dot(h1.astype(jnp.bfloat16), wih1_ref[...],
                          preferred_element_type=jnp.float32)
                  + jnp.dot(h2.astype(jnp.bfloat16), whh1_ref[...],
                            preferred_element_type=jnp.float32)
                  + b1b)
        h2, c2 = gates_to_state(gates1, c2)

    # rnn_out[:, -1, :] of the top layer is h2 after the last step.

    # ---- metadata MLP: M -> 32 -> 16 with ReLU (f32, tiny) ----
    m = meta_ref[...]
    m = jnp.maximum(
        jnp.dot(m, wm1_ref[...], preferred_element_type=jnp.float32) + bm1_ref[...], 0.0)
    m = jnp.maximum(
        jnp.dot(m, wm2_ref[...], preferred_element_type=jnp.float32) + bm2_ref[...], 0.0)

    # ---- fusion head: split accumulating matmul instead of concat + matmul ----
    z = jnp.maximum(
        jnp.dot(h2, wf1h_ref[...], preferred_element_type=jnp.float32)
        + jnp.dot(m, wf1m_ref[...], preferred_element_type=jnp.float32)
        + bf1_ref[...], 0.0)                                   # (BB, 32)

    # final 32 -> 1 projection on the VPU/XLU (avoid a 1-wide MXU result)
    out = jnp.sum(z * wf2r_ref[...], axis=-1, keepdims=True) + bf2_ref[...]
    out_ref[...] = out.astype(out_ref.dtype)


def _pick_batch_tile(B, max_tile=MAX_BATCH_TILE):
    b8 = ((B + 7) // 8) * 8
    return b8 if b8 <= max_tile else max_tile


def hybrid_rnn(seq, meta, kp, *, max_batch_tile=MAX_BATCH_TILE):
    """seq: (B, T, I) batch-first f32; meta: (B, M) f32; kp: kernel params (see prepare)."""
    B, T, _ = seq.shape
    G = 4 * HIDDEN_SIZE
    batch_tile = _pick_batch_tile(B, max_batch_tile)
    n_tiles = pl.cdiv(B, batch_tile)
    B_pad = n_tiles * batch_tile

    # Hoist the K=3 input projection (and fused layer-0 bias) into XLA; pass time-major.
    xw0 = jnp.einsum('bti,ig->btg', seq, kp["wih0"],
                     precision=jax.lax.Precision.HIGHEST) + kp["b0"]      # (B, T, 4H)
    xw0 = jnp.transpose(xw0, (1, 0, 2))                                    # (T, B, 4H)
    xw0 = jnp.pad(xw0, ((0, 0), (0, B_pad - B), (0, 0)))
    meta_p = jnp.pad(meta, ((0, B_pad - B), (0, 0)))

    weight_args = (kp["whh0"], kp["wih1"], kp["whh1"], kp["b1"],
                   kp["wm1"], kp["bm1"], kp["wm2"], kp["bm2"],
                   kp["wf1h"], kp["wf1m"], kp["bf1"],
                   kp["wf2r"], kp["bf2"])

    def full(arr):
        # whole-array block, revisited across the batch grid (no re-DMA)
        return pl.BlockSpec(arr.shape, lambda i: (0,) * arr.ndim)

    in_specs = ([pl.BlockSpec((T, batch_tile, G), lambda i: (0, i, 0)),
                 pl.BlockSpec((batch_tile, meta.shape[1]), lambda i: (i, 0))]
                + [full(w) for w in weight_args])

    out = pl.pallas_call(
        hybrid_rnn_kernel,
        out_shape=jax.ShapeDtypeStruct((B_pad, OUTPUT_SIZE), jnp.float32),
        grid_spec=pltpu.PrefetchScalarGridSpec(
            num_scalar_prefetch=0,
            grid=(n_tiles,),
            in_specs=in_specs,
            out_specs=pl.BlockSpec((batch_tile, OUTPUT_SIZE), lambda i: (i, 0))),
        compiler_params=pltpu.CompilerParams(
            dimension_semantics=("parallel",)),
    )(xw0, meta_p, *weight_args)
    return out[:B]


def init_params(key, H=HIDDEN_SIZE, I=SEQUENCE_INPUT_SIZE, M=METADATA_SIZE, O=OUTPUT_SIZE):
    """PyTorch-style uniform(-1/sqrt(fan), 1/sqrt(fan)) init; LSTM biases (b_ih + b_hh) fused.
    Weights stored pre-transposed as (in_features, out_features)."""
    def unif(k, shape, fan):
        bound = 1.0 / jnp.sqrt(jnp.float32(fan))
        return jax.random.uniform(k, shape, jnp.float32, -bound, bound)

    ks = jax.random.split(key, 20)
    p = {}
    p["wih0"] = unif(ks[0], (I, 4 * H), H)
    p["whh0"] = unif(ks[1], (H, 4 * H), H)
    p["b0"] = unif(ks[2], (1, 4 * H), H) + unif(ks[3], (1, 4 * H), H)
    p["wih1"] = unif(ks[4], (H, 4 * H), H)
    p["whh1"] = unif(ks[5], (H, 4 * H), H)
    p["b1"] = unif(ks[6], (1, 4 * H), H) + unif(ks[7], (1, 4 * H), H)
    p["wm1"] = unif(ks[8], (M, 32), M)
    p["bm1"] = unif(ks[9], (1, 32), M)
    p["wm2"] = unif(ks[10], (32, 16), 32)
    p["bm2"] = unif(ks[11], (1, 16), 32)
    p["wf1"] = unif(ks[12], (H + 16, 32), H + 16)
    p["bf1"] = unif(ks[13], (1, 32), H + 16)
    p["wf2"] = unif(ks[14], (32, O), 32)
    p["bf2"] = unif(ks[15], (1, O), 32)
    return p


def prepare_kernel_params(p, H=HIDDEN_SIZE):
    """Kernel-layout params: recurrent weights in bf16 (MXU operands, f32 accumulation),
    everything else (biases, MLP / fusion weights, input projection) in f32."""
    kp = {}
    kp["wih0"] = p["wih0"]                                   # f32, used in the XLA wrapper
    kp["b0"] = p["b0"]                                       # f32, folded into xw0 in wrapper
    kp["whh0"] = p["whh0"].astype(jnp.bfloat16)              # (H, 4H)
    kp["wih1"] = p["wih1"].astype(jnp.bfloat16)              # (H, 4H)
    kp["whh1"] = p["whh1"].astype(jnp.bfloat16)              # (H, 4H)
    kp["b1"] = p["b1"]                                       # (1, 4H) f32
    kp["wm1"], kp["bm1"] = p["wm1"], p["bm1"]
    kp["wm2"], kp["bm2"] = p["wm2"], p["bm2"]
    kp["wf1h"] = p["wf1"][:H, :]                             # (H, 32)
    kp["wf1m"] = p["wf1"][H:, :]                             # (16, 32)
    kp["bf1"] = p["bf1"]                                     # (1, 32)
    kp["wf2r"] = p["wf2"].T                                  # (1, 32)
    kp["bf2"] = p["bf2"]                                     # (1, 1)
    return kp


def hybrid_rnn_reference(seq, meta, p):
    """Pure-JAX reference (same math as the PyTorch module) for correctness."""
    B, T, _ = seq.shape
    H = HIDDEN_SIZE

    def cell(x, h, c, wih, whh, b):
        g = x @ wih + h @ whh + b
        i = jax.nn.sigmoid(g[:, :H]); f = jax.nn.sigmoid(g[:, H:2 * H])
        gg = jnp.tanh(g[:, 2 * H:3 * H]); o = jax.nn.sigmoid(g[:, 3 * H:])
        c = f * c + i * gg
        return o * jnp.tanh(c), c

    h1 = c1 = h2 = c2 = jnp.zeros((B, H), jnp.float32)
    for t in range(T):
        h1, c1 = cell(seq[:, t, :], h1, c1, p["wih0"], p["whh0"], p["b0"])
        h2, c2 = cell(h1, h2, c2, p["wih1"], p["whh1"], p["b1"])
    m = jnp.maximum(meta @ p["wm1"] + p["bm1"], 0.0)
    m = jnp.maximum(m @ p["wm2"] + p["bm2"], 0.0)
    comb = jnp.concatenate([h2, m], axis=1)
    z = jnp.maximum(comb @ p["wf1"] + p["bf1"], 0.0)
    return z @ p["wf2"] + p["bf2"]


if __name__ == "__main__":
    key = jax.random.PRNGKey(0)
    k_params, k_seq, k_meta = jax.random.split(key, 3)

    B, T = 2, 8
    seq = jax.random.normal(k_seq, (B, T, SEQUENCE_INPUT_SIZE), jnp.float32)
    meta = jax.random.normal(k_meta, (B, METADATA_SIZE), jnp.float32)

    params = init_params(k_params)
    kparams = prepare_kernel_params(params)

    out = hybrid_rnn(seq, meta, kparams)
    out = jax.block_until_ready(out)
    assert out.shape == (B, OUTPUT_SIZE)

    ref = hybrid_rnn_reference(seq, meta, params)
    # bf16 MXU operands (f32 accumulation) -> loosened tolerance vs. the pure-f32 reference.
    assert jnp.allclose(out, ref, rtol=2e-2, atol=2e-2), (out, ref)

    print("KERNEL_OK")
</pallas_src>

<mosaic_0001>
module attributes {stable_mosaic.version = 11 : i64} {
  func.func @hybrid_rnn_kernel(%arg0: i32, %arg1: memref<8x8x256xf32, #tpu.memory_space<vmem>>, %arg2: memref<8x5xf32, #tpu.memory_space<vmem>>, %arg3: memref<64x256xbf16, #tpu.memory_space<vmem>>, %arg4: memref<64x256xbf16, #tpu.memory_space<vmem>>, %arg5: memref<64x256xbf16, #tpu.memory_space<vmem>>, %arg6: memref<1x256xf32, #tpu.memory_space<vmem>>, %arg7: memref<5x32xf32, #tpu.memory_space<vmem>>, %arg8: memref<1x32xf32, #tpu.memory_space<vmem>>, %arg9: memref<32x16xf32, #tpu.memory_space<vmem>>, %arg10: memref<1x16xf32, #tpu.memory_space<vmem>>, %arg11: memref<64x32xf32, #tpu.memory_space<vmem>>, %arg12: memref<16x32xf32, #tpu.memory_space<vmem>>, %arg13: memref<1x32xf32, #tpu.memory_space<vmem>>, %arg14: memref<1x32xf32, #tpu.memory_space<vmem>>, %arg15: memref<1x1xf32, #tpu.memory_space<vmem>>, %arg16: memref<8x1xf32, #tpu.memory_space<vmem>>) attributes {dimension_semantics = [#tpu.dimension_semantics<parallel>], iteration_bounds = array<i64: 1>, scalar_prefetch = 0 : i64, scratch_operands = 0 : i64, tpu.core_type = #tpu.core_type<tc>, window_params = [{transform_indices = @transform_0, window_bounds = array<i64: 8, 8, 256>}, {transform_indices = @transform_1, window_bounds = array<i64: 8, 5>}, {pipeline_mode = #tpu.pipeline_mode<synchronous>, transform_indices = @transform_2, window_bounds = array<i64: 64, 256>}, {pipeline_mode = #tpu.pipeline_mode<synchronous>, transform_indices = @transform_3, window_bounds = array<i64: 64, 256>}, {pipeline_mode = #tpu.pipeline_mode<synchronous>, transform_indices = @transform_4, window_bounds = array<i64: 64, 256>}, {pipeline_mode = #tpu.pipeline_mode<synchronous>, transform_indices = @transform_5, window_bounds = array<i64: 1, 256>}, {pipeline_mode = #tpu.pipeline_mode<synchronous>, transform_indices = @transform_6, window_bounds = array<i64: 5, 32>}, {pipeline_mode = #tpu.pipeline_mode<synchronous>, transform_indices = @transform_7, window_bounds = array<i64: 1, 32>}, {pipeline_mode = #tpu.pipeline_mode<synchronous>, transform_indices = @transform_8, window_bounds = array<i64: 32, 16>}, {pipeline_mode = #tpu.pipeline_mode<synchronous>, transform_indices = @transform_9, window_bounds = array<i64: 1, 16>}, {pipeline_mode = #tpu.pipeline_mode<synchronous>, transform_indices = @transform_10, window_bounds = array<i64: 64, 32>}, {pipeline_mode = #tpu.pipeline_mode<synchronous>, transform_indices = @transform_11, window_bounds = array<i64: 16, 32>}, {pipeline_mode = #tpu.pipeline_mode<synchronous>, transform_indices = @transform_12, window_bounds = array<i64: 1, 32>}, {pipeline_mode = #tpu.pipeline_mode<synchronous>, transform_indices = @transform_13, window_bounds = array<i64: 1, 32>}, {pipeline_mode = #tpu.pipeline_mode<synchronous>, transform_indices = @transform_14, window_bounds = array<i64: 1, 1>}, {transform_indices = @transform_15, window_bounds = array<i64: 8, 1>}]} {
    %cst = arith.constant 0.000000e+00 : f32
    %0 = vector.broadcast %cst : f32 to vector<8x64xf32>
    %cst_0 = arith.constant 0.000000e+00 : f32
    %1 = vector.broadcast %cst_0 : f32 to vector<8x64xf32>
    %cst_1 = arith.constant 0.000000e+00 : f32
    %2 = vector.broadcast %cst_1 : f32 to vector<8x64xf32>
    %cst_2 = arith.constant 0.000000e+00 : f32
    %3 = vector.broadcast %cst_2 : f32 to vector<8x64xf32>
    %c0 = arith.constant 0 : index
    %c0_3 = arith.constant 0 : index
    %4 = vector.load %arg6[%c0, %c0_3] : memref<1x256xf32, #tpu.memory_space<vmem>>, vector<1x256xf32>
    %5 = vector.shape_cast %4 : vector<1x256xf32> to vector<1x256xf32>
    %6 = vector.broadcast %5 : vector<1x256xf32> to vector<8x256xf32>
    %c0_4 = arith.constant 0 : index
    %c0_5 = arith.constant 0 : index
    %c0_6 = arith.constant 0 : index
    %7 = vector.load %arg1[%c0_4, %c0_5, %c0_6] : memref<8x8x256xf32, #tpu.memory_space<vmem>>, vector<1x8x256xf32>
    %8 = vector.shape_cast %7 : vector<1x8x256xf32> to vector<8x256xf32>
    %9 = arith.truncf %0 : vector<8x64xf32> to vector<8x64xbf16>
    %c0_7 = arith.constant 0 : index
    %c0_8 = arith.constant 0 : index
    %10 = vector.load %arg3[%c0_7, %c0_8] : memref<64x256xbf16, #tpu.memory_space<vmem>>, vector<64x256xbf16>
    %cst_9 = arith.constant dense<0.000000e+00> : vector<8x256xf32>
    %11 = tpu.matmul %9, %10, %cst_9 {dimension_numbers = #tpu.dot_dimension_numbers<[1], [0], [0], [1], [0, 0, 1, 1], [], []>} : vector<8x64xbf16>, vector<64x256xbf16>, vector<8x256xf32> -> vector<8x256xf32>
    %12 = arith.addf %8, %11 : vector<8x256xf32>
    %13 = vector.extract_strided_slice %12 {offsets = [0, 0], sizes = [8, 64], strides = [1, 1]} : vector<8x256xf32> to vector<8x64xf32>
    %14 = arith.negf %13 : vector<8x64xf32>
    %15 = math.exp %14 : vector<8x64xf32>
    %cst_10 = arith.constant 1.000000e+00 : f32
    %16 = vector.broadcast %cst_10 : f32 to vector<8x64xf32>
    %17 = arith.addf %16, %15 : vector<8x64xf32>
    %18 = arith.divf %16, %17 : vector<8x64xf32>
    %19 = vector.extract_strided_slice %12 {offsets = [0, 64], sizes = [8, 64], strides = [1, 1]} : vector<8x256xf32> to vector<8x64xf32>
    %20 = arith.negf %19 : vector<8x64xf32>
    %21 = math.exp %20 : vector<8x64xf32>
    %cst_11 = arith.constant 1.000000e+00 : f32
    %22 = vector.broadcast %cst_11 : f32 to vector<8x64xf32>
    %23 = arith.addf %22, %21 : vector<8x64xf32>
    %24 = arith.divf %22, %23 : vector<8x64xf32>
    %25 = vector.extract_strided_slice %12 {offsets = [0, 128], sizes = [8, 64], strides = [1, 1]} : vector<8x256xf32> to vector<8x64xf32>
    %26 = math.tanh %25 : vector<8x64xf32>
    %27 = vector.extract_strided_slice %12 {offsets = [0, 192], sizes = [8, 64], strides = [1, 1]} : vector<8x256xf32> to vector<8x64xf32>
    %28 = arith.negf %27 : vector<8x64xf32>
    %29 = math.exp %28 : vector<8x64xf32>
    %cst_12 = arith.constant 1.000000e+00 : f32
    %30 = vector.broadcast %cst_12 : f32 to vector<8x64xf32>
    %31 = arith.addf %30, %29 : vector<8x64xf32>
    %32 = arith.divf %30, %31 : vector<8x64xf32>
    %33 = arith.mulf %24, %1 : vector<8x64xf32>
    %34 = arith.mulf %18, %26 : vector<8x64xf32>
    %35 = arith.addf %33, %34 : vector<8x64xf32>
    %36 = math.tanh %35 : vector<8x64xf32>
    %37 = arith.mulf %32, %36 : vector<8x64xf32>
    %38 = arith.truncf %37 : vector<8x64xf32> to vector<8x64xbf16>
    %c0_13 = arith.constant 0 : index
    %c0_14 = arith.constant 0 : index
    %39 = vector.load %arg4[%c0_13, %c0_14] : memref<64x256xbf16, #tpu.memory_space<vmem>>, vector<64x256xbf16>
    %cst_15 = arith.constant dense<0.000000e+00> : vector<8x256xf32>
    %40 = tpu.matmul %38, %39, %cst_15 {dimension_numbers = #tpu.dot_dimension_numbers<[1], [0], [0], [1], [0, 0, 1, 1], [], []>} : vector<8x64xbf16>, vector<64x256xbf16>, vector<8x256xf32> -> vector<8x256xf32>
    %41 = arith.truncf %2 : vector<8x64xf32> to vector<8x64xbf16>
    %c0_16 = arith.constant 0 : index
    %c0_17 = arith.constant 0 : index
    %42 = vector.load %arg5[%c0_16, %c0_17] : memref<64x256xbf16, #tpu.memory_space<vmem>>, vector<64x256xbf16>
    %cst_18 = arith.constant dense<0.000000e+00> : vector<8x256xf32>
    %43 = tpu.matmul %41, %42, %cst_18 {dimension_numbers = #tpu.dot_dimension_numbers<[1], [0], [0], [1], [0, 0, 1, 1], [], []>} : vector<8x64xbf16>, vector<64x256xbf16>, vector<8x256xf32> -> vector<8x256xf32>
    %44 = arith.addf %40, %43 : vector<8x256xf32>
    %45 = arith.addf %44, %6 : vector<8x256xf32>
    %46 = vector.extract_strided_slice %45 {offsets = [0, 0], sizes = [8, 64], strides = [1, 1]} : vector<8x256xf32> to vector<8x64xf32>
    %47 = arith.negf %46 : vector<8x64xf32>
    %48 = math.exp %47 : vector<8x64xf32>
    %cst_19 = arith.constant 1.000000e+00 : f32
    %49 = vector.broadcast %cst_19 : f32 to vector<8x64xf32>
    %50 = arith.addf %49, %48 : vector<8x64xf32>
    %51 = arith.divf %49, %50 : vector<8x64xf32>
    %52 = vector.extract_strided_slice %45 {offsets = [0, 64], sizes = [8, 64], strides = [1, 1]} : vector<8x256xf32> to vector<8x64xf32>
    %53 = arith.negf %52 : vector<8x64xf32>
    %54 = math.exp %53 : vector<8x64xf32>
    %cst_20 = arith.constant 1.000000e+00 : f32
    %55 = vector.broadcast %cst_20 : f32 to vector<8x64xf32>
    %56 = arith.addf %55, %54 : vector<8x64xf32>
    %57 = arith.divf %55, %56 : vector<8x64xf32>
    %58 = vector.extract_strided_slice %45 {offsets = [0, 128], sizes = [8, 64], strides = [1, 1]} : vector<8x256xf32> to vector<8x64xf32>
    %59 = math.tanh %58 : vector<8x64xf32>
    %60 = vector.extract_strided_slice %45 {offsets = [0, 192], sizes = [8, 64], strides = [1, 1]} : vector<8x256xf32> to vector<8x64xf32>
    %61 = arith.negf %60 : vector<8x64xf32>
    %62 = math.exp %61 : vector<8x64xf32>
    %cst_21 = arith.constant 1.000000e+00 : f32
    %63 = vector.broadcast %cst_21 : f32 to vector<8x64xf32>
    %64 = arith.addf %63, %62 : vector<8x64xf32>
    %65 = arith.divf %63, %64 : vector<8x64xf32>
    %66 = arith.mulf %57, %3 : vector<8x64xf32>
    %67 = arith.mulf %51, %59 : vector<8x64xf32>
    %68 = arith.addf %66, %67 : vector<8x64xf32>
    %69 = math.tanh %68 : vector<8x64xf32>
    %70 = arith.mulf %65, %69 : vector<8x64xf32>
    %c1 = arith.constant 1 : index
    %c0_22 = arith.constant 0 : index
    %c0_23 = arith.constant 0 : index
    %71 = vector.load %arg1[%c1, %c0_22, %c0_23] : memref<8x8x256xf32, #tpu.memory_space<vmem>>, vector<1x8x256xf32>
    %72 = vector.shape_cast %71 : vector<1x8x256xf32> to vector<8x256xf32>
    %73 = arith.truncf %37 : vector<8x64xf32> to vector<8x64xbf16>
    %c0_24 = arith.constant 0 : index
    %c0_25 = arith.constant 0 : index
    %74 = vector.load %arg3[%c0_24, %c0_25] : memref<64x256xbf16, #tpu.memory_space<vmem>>, vector<64x256xbf16>
    %cst_26 = arith.constant dense<0.000000e+00> : vector<8x256xf32>
    %75 = tpu.matmul %73, %74, %cst_26 {dimension_numbers = #tpu.dot_dimension_numbers<[1], [0], [0], [1], [0, 0, 1, 1], [], []>} : vector<8x64xbf16>, vector<64x256xbf16>, vector<8x256xf32> -> vector<8x256xf32>
    %76 = arith.addf %72, %75 : vector<8x256xf32>
    %77 = vector.extract_strided_slice %76 {offsets = [0, 0], sizes = [8, 64], strides = [1, 1]} : vector<8x256xf32> to vector<8x64xf32>
    %78 = arith.negf %77 : vector<8x64xf32>
    %79 = math.exp %78 : vector<8x64xf32>
    %cst_27 = arith.constant 1.000000e+00 : f32
    %80 = vector.broadcast %cst_27 : f32 to vector<8x64xf32>
    %81 = arith.addf %80, %79 : vector<8x64xf32>
    %82 = arith.divf %80, %81 : vector<8x64xf32>
    %83 = vector.extract_strided_slice %76 {offsets = [0, 64], sizes = [8, 64], strides = [1, 1]} : vector<8x256xf32> to vector<8x64xf32>
    %84 = arith.negf %83 : vector<8x64xf32>
    %85 = math.exp %84 : vector<8x64xf32>
    %cst_28 = arith.constant 1.000000e+00 : f32
    %86 = vector.broadcast %cst_28 : f32 to vector<8x64xf32>
    %87 = arith.addf %86, %85 : vector<8x64xf32>
    %88 = arith.divf %86, %87 : vector<8x64xf32>
    %89 = vector.extract_strided_slice %76 {offsets = [0, 128], sizes = [8, 64], strides = [1, 1]} : vector<8x256xf32> to vector<8x64xf32>
    %90 = math.tanh %89 : vector<8x64xf32>
    %91 = vector.extract_strided_slice %76 {offsets = [0, 192], sizes = [8, 64], strides = [1, 1]} : vector<8x256xf32> to vector<8x64xf32>
    %92 = arith.negf %91 : vector<8x64xf32>
    %93 = math.exp %92 : vector<8x64xf32>
    %cst_29 = arith.constant 1.000000e+00 : f32
    %94 = vector.broadcast %cst_29 : f32 to vector<8x64xf32>
    %95 = arith.addf %94, %93 : vector<8x64xf32>
    %96 = arith.divf %94, %95 : vector<8x64xf32>
    %97 = arith.mulf %88, %35 : vector<8x64xf32>
    %98 = arith.mulf %82, %90 : vector<8x64xf32>
    %99 = arith.addf %97, %98 : vector<8x64xf32>
    %100 = math.tanh %99 : vector<8x64xf32>
    %101 = arith.mulf %96, %100 : vector<8x64xf32>
    %102 = arith.truncf %101 : vector<8x64xf32> to vector<8x64xbf16>
    %c0_30 = arith.constant 0 : index
    %c0_31 = arith.constant 0 : index
    %103 = vector.load %arg4[%c0_30, %c0_31] : memref<64x256xbf16, #tpu.memory_space<vmem>>, vector<64x256xbf16>
    %cst_32 = arith.constant dense<0.000000e+00> : vector<8x256xf32>
    %104 = tpu.matmul %102, %103, %cst_32 {dimension_numbers = #tpu.dot_dimension_numbers<[1], [0], [0], [1], [0, 0, 1, 1], [], []>} : vector<8x64xbf16>, vector<64x256xbf16>, vector<8x256xf32> -> vector<8x256xf32>
    %105 = arith.truncf %70 : vector<8x64xf32> to vector<8x64xbf16>
    %c0_33 = arith.constant 0 : index
    %c0_34 = arith.constant 0 : index
    %106 = vector.load %arg5[%c0_33, %c0_34] : memref<64x256xbf16, #tpu.memory_space<vmem>>, vector<64x256xbf16>
    %cst_35 = arith.constant dense<0.000000e+00> : vector<8x256xf32>
    %107 = tpu.matmul %105, %106, %cst_35 {dimension_numbers = #tpu.dot_dimension_numbers<[1], [0], [0], [1], [0, 0, 1, 1], [], []>} : vector<8x64xbf16>, vector<64x256xbf16>, vector<8x256xf32> -> vector<8x256xf32>
    %108 = arith.addf %104, %107 : vector<8x256xf32>
    %109 = arith.addf %108, %6 : vector<8x256xf32>
    %110 = vector.extract_strided_slice %109 {offsets = [0, 0], sizes = [8, 64], strides = [1, 1]} : vector<8x256xf32> to vector<8x64xf32>
    %111 = arith.negf %110 : vector<8x64xf32>
    %112 = math.exp %111 : vector<8x64xf32>
    %cst_36 = arith.constant 1.000000e+00 : f32
    %113 = vector.broadcast %cst_36 : f32 to vector<8x64xf32>
    %114 = arith.addf %113, %112 : vector<8x64xf32>
    %115 = arith.divf %113, %114 : vector<8x64xf32>
    %116 = vector.extract_strided_slice %109 {offsets = [0, 64], sizes = [8, 64], strides = [1, 1]} : vector<8x256xf32> to vector<8x64xf32>
    %117 = arith.negf %116 : vector<8x64xf32>
    %118 = math.exp %117 : vector<8x64xf32>
    %cst_37 = arith.constant 1.000000e+00 : f32
    %119 = vector.broadcast %cst_37 : f32 to vector<8x64xf32>
    %120 = arith.addf %119, %118 : vector<8x64xf32>
    %121 = arith.divf %119, %120 : vector<8x64xf32>
    %122 = vector.extract_strided_slice %109 {offsets = [0, 128], sizes = [8, 64], strides = [1, 1]} : vector<8x256xf32> to vector<8x64xf32>
    %123 = math.tanh %122 : vector<8x64xf32>
    %124 = vector.extract_strided_slice %109 {offsets = [0, 192], sizes = [8, 64], strides = [1, 1]} : vector<8x256xf32> to vector<8x64xf32>
    %125 = arith.negf %124 : vector<8x64xf32>
    %126 = math.exp %125 : vector<8x64xf32>
    %cst_38 = arith.constant 1.000000e+00 : f32
    %127 = vector.broadcast %cst_38 : f32 to vector<8x64xf32>
    %128 = arith.addf %127, %126 : vector<8x64xf32>
    %129 = arith.divf %127, %128 : vector<8x64xf32>
    %130 = arith.mulf %121, %68 : vector<8x64xf32>
    %131 = arith.mulf %115, %123 : vector<8x64xf32>
    %132 = arith.addf %130, %131 : vector<8x64xf32>
    %133 = math.tanh %132 : vector<8x64xf32>
    %134 = arith.mulf %129, %133 : vector<8x64xf32>
    %c2 = arith.constant 2 : index
    %c0_39 = arith.constant 0 : index
    %c0_40 = arith.constant 0 : index
    %135 = vector.load %arg1[%c2, %c0_39, %c0_40] : memref<8x8x256xf32, #tpu.memory_space<vmem>>, vector<1x8x256xf32>
    %136 = vector.shape_cast %135 : vector<1x8x256xf32> to vector<8x256xf32>
    %137 = arith.truncf %101 : vector<8x64xf32> to vector<8x64xbf16>
    %c0_41 = arith.constant 0 : index
    %c0_42 = arith.constant 0 : index
    %138 = vector.load %arg3[%c0_41, %c0_42] : memref<64x256xbf16, #tpu.memory_space<vmem>>, vector<64x256xbf16>
    %cst_43 = arith.constant dense<0.000000e+00> : vector<8x256xf32>
    %139 = tpu.matmul %137, %138, %cst_43 {dimension_numbers = #tpu.dot_dimension_numbers<[1], [0], [0], [1], [0, 0, 1, 1], [], []>} : vector<8x64xbf16>, vector<64x256xbf16>, vector<8x256xf32> -> vector<8x256xf32>
    %140 = arith.addf %136, %139 : vector<8x256xf32>
    %141 = vector.extract_strided_slice %140 {offsets = [0, 0], sizes = [8, 64], strides = [1, 1]} : vector<8x256xf32> to vector<8x64xf32>
    %142 = arith.negf %141 : vector<8x64xf32>
    %143 = math.exp %142 : vector<8x64xf32>
    %cst_44 = arith.constant 1.000000e+00 : f32
    %144 = vector.broadcast %cst_44 : f32 to vector<8x64xf32>
    %145 = arith.addf %144, %143 : vector<8x64xf32>
    %146 = arith.divf %144, %145 : vector<8x64xf32>
    %147 = vector.extract_strided_slice %140 {offsets = [0, 64], sizes = [8, 64], strides = [1, 1]} : vector<8x256xf32> to vector<8x64xf32>
    %148 = arith.negf %147 : vector<8x64xf32>
    %149 = math.exp %148 : vector<8x64xf32>
    %cst_45 = arith.constant 1.000000e+00 : f32
    %150 = vector.broadcast %cst_45 : f32 to vector<8x64xf32>
    %151 = arith.addf %150, %149 : vector<8x64xf32>
    %152 = arith.divf %150, %151 : vector<8x64xf32>
    %153 = vector.extract_strided_slice %140 {offsets = [0, 128], sizes = [8, 64], strides = [1, 1]} : vector<8x256xf32> to vector<8x64xf32>
    %154 = math.tanh %153 : vector<8x64xf32>
    %155 = vector.extract_strided_slice %140 {offsets = [0, 192], sizes = [8, 64], strides = [1, 1]} : vector<8x256xf32> to vector<8x64xf32>
    %156 = arith.negf %155 : vector<8x64xf32>
    %157 = math.exp %156 : vector<8x64xf32>
    %cst_46 = arith.constant 1.000000e+00 : f32
    %158 = vector.broadcast %cst_46 : f32 to vector<8x64xf32>
    %159 = arith.addf %158, %157 : vector<8x64xf32>
    %160 = arith.divf %158, %159 : vector<8x64xf32>
    %161 = arith.mulf %152, %99 : vector<8x64xf32>
    %162 = arith.mulf %146, %154 : vector<8x64xf32>
    %163 = arith.addf %161, %162 : vector<8x64xf32>
    %164 = math.tanh %163 : vector<8x64xf32>
    %165 = arith.mulf %160, %164 : vector<8x64xf32>
    %166 = arith.truncf %165 : vector<8x64xf32> to vector<8x64xbf16>
    %c0_47 = arith.constant 0 : index
    %c0_48 = arith.constant 0 : index
    %167 = vector.load %arg4[%c0_47, %c0_48] : memref<64x256xbf16, #tpu.memory_space<vmem>>, vector<64x256xbf16>
    %cst_49 = arith.constant dense<0.000000e+00> : vector<8x256xf32>
    %168 = tpu.matmul %166, %167, %cst_49 {dimension_numbers = #tpu.dot_dimension_numbers<[1], [0], [0], [1], [0, 0, 1, 1], [], []>} : vector<8x64xbf16>, vector<64x256xbf16>, vector<8x256xf32> -> vector<8x256xf32>
    %169 = arith.truncf %134 : vector<8x64xf32> to vector<8x64xbf16>
    %c0_50 = arith.constant 0 : index
    %c0_51 = arith.constant 0 : index
    %170 = vector.load %arg5[%c0_50, %c0_51] : memref<64x256xbf16, #tpu.memory_space<vmem>>, vector<64x256xbf16>
    %cst_52 = arith.constant dense<0.000000e+00> : vector<8x256xf32>
    %171 = tpu.matmul %169, %170, %cst_52 {dimension_numbers = #tpu.dot_dimension_numbers<[1], [0], [0], [1], [0, 0, 1, 1], [], []>} : vector<8x64xbf16>, vector<64x256xbf16>, vector<8x256xf32> -> vector<8x256xf32>
    %172 = arith.addf %168, %171 : vector<8x256xf32>
    %173 = arith.addf %172, %6 : vector<8x256xf32>
    %174 = vector.extract_strided_slice %173 {offsets = [0, 0], sizes = [8, 64], strides = [1, 1]} : vector<8x256xf32> to vector<8x64xf32>
    %175 = arith.negf %174 : vector<8x64xf32>
    %176 = math.exp %175 : vector<8x64xf32>
    %cst_53 = arith.constant 1.000000e+00 : f32
    %177 = vector.broadcast %cst_53 : f32 to vector<8x64xf32>
    %178 = arith.addf %177, %176 : vector<8x64xf32>
    %179 = arith.divf %177, %178 : vector<8x64xf32>
    %180 = vector.extract_strided_slice %173 {offsets = [0, 64], sizes = [8, 64], strides = [1, 1]} : vector<8x256xf32> to vector<8x64xf32>
    %181 = arith.negf %180 : vector<8x64xf32>
    %182 = math.exp %181 : vector<8x64xf32>
    %cst_54 = arith.constant 1.000000e+00 : f32
    %183 = vector.broadcast %cst_54 : f32 to vector<8x64xf32>
    %184 = arith.addf %183, %182 : vector<8x64xf32>
    %185 = arith.divf %183, %184 : vector<8x64xf32>
    %186 = vector.extract_strided_slice %173 {offsets = [0, 128], sizes = [8, 64], strides = [1, 1]} : vector<8x256xf32> to vector<8x64xf32>
    %187 = math.tanh %186 : vector<8x64xf32>
    %188 = vector.extract_strided_slice %173 {offsets = [0, 192], sizes = [8, 64], strides = [1, 1]} : vector<8x256xf32> to vector<8x64xf32>
    %189 = arith.negf %188 : vector<8x64xf32>
    %190 = math.exp %189 : vector<8x64xf32>
    %cst_55 = arith.constant 1.000000e+00 : f32
    %191 = vector.broadcast %cst_55 : f32 to vector<8x64xf32>
    %192 = arith.addf %191, %190 : vector<8x64xf32>
    %193 = arith.divf %191, %192 : vector<8x64xf32>
    %194 = arith.mulf %185, %132 : vector<8x64xf32>
    %195 = arith.mulf %179, %187 : vector<8x64xf32>
    %196 = arith.addf %194, %195 : vector<8x64xf32>
    %197 = math.tanh %196 : vector<8x64xf32>
    %198 = arith.mulf %193, %197 : vector<8x64xf32>
    %c3 = arith.constant 3 : index
    %c0_56 = arith.constant 0 : index
    %c0_57 = arith.constant 0 : index
    %199 = vector.load %arg1[%c3, %c0_56, %c0_57] : memref<8x8x256xf32, #tpu.memory_space<vmem>>, vector<1x8x256xf32>
    %200 = vector.shape_cast %199 : vector<1x8x256xf32> to vector<8x256xf32>
    %201 = arith.truncf %165 : vector<8x64xf32> to vector<8x64xbf16>
    %c0_58 = arith.constant 0 : index
    %c0_59 = arith.constant 0 : index
    %202 = vector.load %arg3[%c0_58, %c0_59] : memref<64x256xbf16, #tpu.memory_space<vmem>>, vector<64x256xbf16>
    %cst_60 = arith.constant dense<0.000000e+00> : vector<8x256xf32>
    %203 = tpu.matmul %201, %202, %cst_60 {dimension_numbers = #tpu.dot_dimension_numbers<[1], [0], [0], [1], [0, 0, 1, 1], [], []>} : vector<8x64xbf16>, vector<64x256xbf16>, vector<8x256xf32> -> vector<8x256xf32>
    %204 = arith.addf %200, %203 : vector<8x256xf32>
    %205 = vector.extract_strided_slice %204 {offsets = [0, 0], sizes = [8, 64], strides = [1, 1]} : vector<8x256xf32> to vector<8x64xf32>
    %206 = arith.negf %205 : vector<8x64xf32>
    %207 = math.exp %206 : vector<8x64xf32>
    %cst_61 = arith.constant 1.000000e+00 : f32
    %208 = vector.broadcast %cst_61 : f32 to vector<8x64xf32>
    %209 = arith.addf %208, %207 : vector<8x64xf32>
    %210 = arith.divf %208, %209 : vector<8x64xf32>
    %211 = vector.extract_strided_slice %204 {offsets = [0, 64], sizes = [8, 64], strides = [1, 1]} : vector<8x256xf32> to vector<8x64xf32>
    %212 = arith.negf %211 : vector<8x64xf32>
    %213 = math.exp %212 : vector<8x64xf32>
    %cst_62 = arith.constant 1.000000e+00 : f32
    %214 = vector.broadcast %cst_62 : f32 to vector<8x64xf32>
    %215 = arith.addf %214, %213 : vector<8x64xf32>
    %216 = arith.divf %214, %215 : vector<8x64xf32>
    %217 = vector.extract_strided_slice %204 {offsets = [0, 128], sizes = [8, 64], strides = [1, 1]} : vector<8x256xf32> to vector<8x64xf32>
    %218 = math.tanh %217 : vector<8x64xf32>
    %219 = vector.extract_strided_slice %204 {offsets = [0, 192], sizes = [8, 64], strides = [1, 1]} : vector<8x256xf32> to vector<8x64xf32>
    %220 = arith.negf %219 : vector<8x64xf32>
    %221 = math.exp %220 : vector<8x64xf32>
    %cst_63 = arith.constant 1.000000e+00 : f32
    %222 = vector.broadcast %cst_63 : f32 to vector<8x64xf32>
    %223 = arith.addf %222, %221 : vector<8x64xf32>
    %224 = arith.divf %222, %223 : vector<8x64xf32>
    %225 = arith.mulf %216, %163 : vector<8x64xf32>
    %226 = arith.mulf %210, %218 : vector<8x64xf32>
    %227 = arith.addf %225, %226 : vector<8x64xf32>
    %228 = math.tanh %227 : vector<8x64xf32>
    %229 = arith.mulf %224, %228 : vector<8x64xf32>
    %230 = arith.truncf %229 : vector<8x64xf32> to vector<8x64xbf16>
    %c0_64 = arith.constant 0 : index
    %c0_65 = arith.constant 0 : index
    %231 = vector.load %arg4[%c0_64, %c0_65] : memref<64x256xbf16, #tpu.memory_space<vmem>>, vector<64x256xbf16>
    %cst_66 = arith.constant dense<0.000000e+00> : vector<8x256xf32>
    %232 = tpu.matmul %230, %231, %cst_66 {dimension_numbers = #tpu.dot_dimension_numbers<[1], [0], [0], [1], [0, 0, 1, 1], [], []>} : vector<8x64xbf16>, vector<64x256xbf16>, vector<8x256xf32> -> vector<8x256xf32>
    %233 = arith.truncf %198 : vector<8x64xf32> to vector<8x64xbf16>
    %c0_67 = arith.constant 0 : index
    %c0_68 = arith.constant 0 : index
    %234 = vector.load %arg5[%c0_67, %c0_68] : memref<64x256xbf16, #tpu.memory_space<vmem>>, vector<64x256xbf16>
    %cst_69 = arith.constant dense<0.000000e+00> : vector<8x256xf32>
    %235 = tpu.matmul %233, %234, %cst_69 {dimension_numbers = #tpu.dot_dimension_numbers<[1], [0], [0], [1], [0, 0, 1, 1], [], []>} : vector<8x64xbf16>, vector<64x256xbf16>, vector<8x256xf32> -> vector<8x256xf32>
    %236 = arith.addf %232, %235 : vector<8x256xf32>
    %237 = arith.addf %236, %6 : vector<8x256xf32>
    %238 = vector.extract_strided_slice %237 {offsets = [0, 0], sizes = [8, 64], strides = [1, 1]} : vector<8x256xf32> to vector<8x64xf32>
    %239 = arith.negf %238 : vector<8x64xf32>
    %240 = math.exp %239 : vector<8x64xf32>
    %cst_70 = arith.constant 1.000000e+00 : f32
    %241 = vector.broadcast %cst_70 : f32 to vector<8x64xf32>
    %242 = arith.addf %241, %240 : vector<8x64xf32>
    %243 = arith.divf %241, %242 : vector<8x64xf32>
    %244 = vector.extract_strided_slice %237 {offsets = [0, 64], sizes = [8, 64], strides = [1, 1]} : vector<8x256xf32> to vector<8x64xf32>
    %245 = arith.negf %244 : vector<8x64xf32>
    %246 = math.exp %245 : vector<8x64xf32>
    %cst_71 = arith.constant 1.000000e+00 : f32
    %247 = vector.broadcast %cst_71 : f32 to vector<8x64xf32>
    %248 = arith.addf %247, %246 : vector<8x64xf32>
    %249 = arith.divf %247, %248 : vector<8x64xf32>
    %250 = vector.extract_strided_slice %237 {offsets = [0, 128], sizes = [8, 64], strides = [1, 1]} : vector<8x256xf32> to vector<8x64xf32>
    %251 = math.tanh %250 : vector<8x64xf32>
    %252 = vector.extract_strided_slice %237 {offsets = [0, 192], sizes = [8, 64], strides = [1, 1]} : vector<8x256xf32> to vector<8x64xf32>
    %253 = arith.negf %252 : vector<8x64xf32>
    %254 = math.exp %253 : vector<8x64xf32>
    %cst_72 = arith.constant 1.000000e+00 : f32
    %255 = vector.broadcast %cst_72 : f32 to vector<8x64xf32>
    %256 = arith.addf %255, %254 : vector<8x64xf32>
    %257 = arith.divf %255, %256 : vector<8x64xf32>
    %258 = arith.mulf %249, %196 : vector<8x64xf32>
    %259 = arith.mulf %243, %251 : vector<8x64xf32>
    %260 = arith.addf %258, %259 : vector<8x64xf32>
    %261 = math.tanh %260 : vector<8x64xf32>
    %262 = arith.mulf %257, %261 : vector<8x64xf32>
    %c4 = arith.constant 4 : index
    %c0_73 = arith.constant 0 : index
    %c0_74 = arith.constant 0 : index
    %263 = vector.load %arg1[%c4, %c0_73, %c0_74] : memref<8x8x256xf32, #tpu.memory_space<vmem>>, vector<1x8x256xf32>
    %264 = vector.shape_cast %263 : vector<1x8x256xf32> to vector<8x256xf32>
    %265 = arith.truncf %229 : vector<8x64xf32> to vector<8x64xbf16>
    %c0_75 = arith.constant 0 : index
    %c0_76 = arith.constant 0 : index
    %266 = vector.load %arg3[%c0_75, %c0_76] : memref<64x256xbf16, #tpu.memory_space<vmem>>, vector<64x256xbf16>
    %cst_77 = arith.constant dense<0.000000e+00> : vector<8x256xf32>
    %267 = tpu.matmul %265, %266, %cst_77 {dimension_numbers = #tpu.dot_dimension_numbers<[1], [0], [0], [1], [0, 0, 1, 1], [], []>} : vector<8x64xbf16>, vector<64x256xbf16>, vector<8x256xf32> -> vector<8x256xf32>
    %268 = arith.addf %264, %267 : vector<8x256xf32>
    %269 = vector.extract_strided_slice %268 {offsets = [0, 0], sizes = [8, 64], strides = [1, 1]} : vector<8x256xf32> to vector<8x64xf32>
    %270 = arith.negf %269 : vector<8x64xf32>
    %271 = math.exp %270 : vector<8x64xf32>
    %cst_78 = arith.constant 1.000000e+00 : f32
    %272 = vector.broadcast %cst_78 : f32 to vector<8x64xf32>
    %273 = arith.addf %272, %271 : vector<8x64xf32>
    %274 = arith.divf %272, %273 : vector<8x64xf32>
    %275 = vector.extract_strided_slice %268 {offsets = [0, 64], sizes = [8, 64], strides = [1, 1]} : vector<8x256xf32> to vector<8x64xf32>
    %276 = arith.negf %275 : vector<8x64xf32>
    %277 = math.exp %276 : vector<8x64xf32>
    %cst_79 = arith.constant 1.000000e+00 : f32
    %278 = vector.broadcast %cst_79 : f32 to vector<8x64xf32>
    %279 = arith.addf %278, %277 : vector<8x64xf32>
    %280 = arith.divf %278, %279 : vector<8x64xf32>
    %281 = vector.extract_strided_slice %268 {offsets = [0, 128], sizes = [8, 64], strides = [1, 1]} : vector<8x256xf32> to vector<8x64xf32>
    %282 = math.tanh %281 : vector<8x64xf32>
    %283 = vector.extract_strided_slice %268 {offsets = [0, 192], sizes = [8, 64], strides = [1, 1]} : vector<8x256xf32> to vector<8x64xf32>
    %284 = arith.negf %283 : vector<8x64xf32>
    %285 = math.exp %284 : vector<8x64xf32>
    %cst_80 = arith.constant 1.000000e+00 : f32
    %286 = vector.broadcast %cst_80 : f32 to vector<8x64xf32>
    %287 = arith.addf %286, %285 : vector<8x64xf32>
    %288 = arith.divf %286, %287 : vector<8x64xf32>
    %289 = arith.mulf %280, %227 : vector<8x64xf32>
    %290 = arith.mulf %274, %282 : vector<8x64xf32>
    %291 = arith.addf %289, %290 : vector<8x64xf32>
    %292 = math.tanh %291 : vector<8x64xf32>
    %293 = arith.mulf %288, %292 : vector<8x64xf32>
    %294 = arith.truncf %293 : vector<8x64xf32> to vector<8x64xbf16>
    %c0_81 = arith.constant 0 : index
    %c0_82 = arith.constant 0 : index
    %295 = vector.load %arg4[%c0_81, %c0_82] : memref<64x256xbf16, #tpu.memory_space<vmem>>, vector<64x256xbf16>
    %cst_83 = arith.constant dense<0.000000e+00> : vector<8x256xf32>
    %296 = tpu.matmul %294, %295, %cst_83 {dimension_numbers = #tpu.dot_dimension_numbers<[1], [0], [0], [1], [0, 0, 1, 1], [], []>} : vector<8x64xbf16>, vector<64x256xbf16>, vector<8x256xf32> -> vector<8x256xf32>
    %297 = arith.truncf %262 : vector<8x64xf32> to vector<8x64xbf16>
    %c0_84 = arith.constant 0 : index
    %c0_85 = arith.constant 0 : index
    %298 = vector.load %arg5[%c0_84, %c0_85] : memref<64x256xbf16, #tpu.memory_space<vmem>>, vector<64x256xbf16>
    %cst_86 = arith.constant dense<0.000000e+00> : vector<8x256xf32>
    %299 = tpu.matmul %297, %298, %cst_86 {dimension_numbers = #tpu.dot_dimension_numbers<[1], [0], [0], [1], [0, 0, 1, 1], [], []>} : vector<8x64xbf16>, vector<64x256xbf16>, vector<8x256xf32> -> vector<8x256xf32>
    %300 = arith.addf %296, %299 : vector<8x256xf32>
    %301 = arith.addf %300, %6 : vector<8x256xf32>
    %302 = vector.extract_strided_slice %301 {offsets = [0, 0], sizes = [8, 64], strides = [1, 1]} : vector<8x256xf32> to vector<8x64xf32>
    %303 = arith.negf %302 : vector<8x64xf32>
    %304 = math.exp %303 : vector<8x64xf32>
    %cst_87 = arith.constant 1.000000e+00 : f32
    %305 = vector.broadcast %cst_87 : f32 to vector<8x64xf32>
    %306 = arith.addf %305, %304 : vector<8x64xf32>
    %307 = arith.divf %305, %306 : vector<8x64xf32>
    %308 = vector.extract_strided_slice %301 {offsets = [0, 64], sizes = [8, 64], strides = [1, 1]} : vector<8x256xf32> to vector<8x64xf32>
    %309 = arith.negf %308 : vector<8x64xf32>
    %310 = math.exp %309 : vector<8x64xf32>
    %cst_88 = arith.constant 1.000000e+00 : f32
    %311 = vector.broadcast %cst_88 : f32 to vector<8x64xf32>
    %312 = arith.addf %311, %310 : vector<8x64xf32>
    %313 = arith.divf %311, %312 : vector<8x64xf32>
    %314 = vector.extract_strided_slice %301 {offsets = [0, 128], sizes = [8, 64], strides = [1, 1]} : vector<8x256xf32> to vector<8x64xf32>
    %315 = math.tanh %314 : vector<8x64xf32>
    %316 = vector.extract_strided_slice %301 {offsets = [0, 192], sizes = [8, 64], strides = [1, 1]} : vector<8x256xf32> to vector<8x64xf32>
    %317 = arith.negf %316 : vector<8x64xf32>
    %318 = math.exp %317 : vector<8x64xf32>
    %cst_89 = arith.constant 1.000000e+00 : f32
    %319 = vector.broadcast %cst_89 : f32 to vector<8x64xf32>
    %320 = arith.addf %319, %318 : vector<8x64xf32>
    %321 = arith.divf %319, %320 : vector<8x64xf32>
    %322 = arith.mulf %313, %260 : vector<8x64xf32>
    %323 = arith.mulf %307, %315 : vector<8x64xf32>
    %324 = arith.addf %322, %323 : vector<8x64xf32>
    %325 = math.tanh %324 : vector<8x64xf32>
    %326 = arith.mulf %321, %325 : vector<8x64xf32>
    %c5 = arith.constant 5 : index
    %c0_90 = arith.constant 0 : index
    %c0_91 = arith.constant 0 : index
    %327 = vector.load %arg1[%c5, %c0_90, %c0_91] : memref<8x8x256xf32, #tpu.memory_space<vmem>>, vector<1x8x256xf32>
    %328 = vector.shape_cast %327 : vector<1x8x256xf32> to vector<8x256xf32>
    %329 = arith.truncf %293 : vector<8x64xf32> to vector<8x64xbf16>
    %c0_92 = arith.constant 0 : index
    %c0_93 = arith.constant 0 : index
    %330 = vector.load %arg3[%c0_92, %c0_93] : memref<64x256xbf16, #tpu.memory_space<vmem>>, vector<64x256xbf16>
    %cst_94 = arith.constant dense<0.000000e+00> : vector<8x256xf32>
    %331 = tpu.matmul %329, %330, %cst_94 {dimension_numbers = #tpu.dot_dimension_numbers<[1], [0], [0], [1], [0, 0, 1, 1], [], []>} : vector<8x64xbf16>, vector<64x256xbf16>, vector<8x256xf32> -> vector<8x256xf32>
    %332 = arith.addf %328, %331 : vector<8x256xf32>
    %333 = vector.extract_strided_slice %332 {offsets = [0, 0], sizes = [8, 64], strides = [1, 1]} : vector<8x256xf32> to vector<8x64xf32>
    %334 = arith.negf %333 : vector<8x64xf32>
    %335 = math.exp %334 : vector<8x64xf32>
    %cst_95 = arith.constant 1.000000e+00 : f32
    %336 = vector.broadcast %cst_95 : f32 to vector<8x64xf32>
    %337 = arith.addf %336, %335 : vector<8x64xf32>
    %338 = arith.divf %336, %337 : vector<8x64xf32>
    %339 = vector.extract_strided_slice %332 {offsets = [0, 64], sizes = [8, 64], strides = [1, 1]} : vector<8x256xf32> to vector<8x64xf32>
    %340 = arith.negf %339 : vector<8x64xf32>
    %341 = math.exp %340 : vector<8x64xf32>
    %cst_96 = arith.constant 1.000000e+00 : f32
    %342 = vector.broadcast %cst_96 : f32 to vector<8x64xf32>
    %343 = arith.addf %342, %341 : vector<8x64xf32>
    %344 = arith.divf %342, %343 : vector<8x64xf32>
    %345 = vector.extract_strided_slice %332 {offsets = [0, 128], sizes = [8, 64], strides = [1, 1]} : vector<8x256xf32> to vector<8x64xf32>
    %346 = math.tanh %345 : vector<8x64xf32>
    %347 = vector.extract_strided_slice %332 {offsets = [0, 192], sizes = [8, 64], strides = [1, 1]} : vector<8x256xf32> to vector<8x64xf32>
    %348 = arith.negf %347 : vector<8x64xf32>
    %349 = math.exp %348 : vector<8x64xf32>
    %cst_97 = arith.constant 1.000000e+00 : f32
    %350 = vector.broadcast %cst_97 : f32 to vector<8x64xf32>
    %351 = arith.addf %350, %349 : vector<8x64xf32>
    %352 = arith.divf %350, %351 : vector<8x64xf32>
    %353 = arith.mulf %344, %291 : vector<8x64xf32>
    %354 = arith.mulf %338, %346 : vector<8x64xf32>
    %355 = arith.addf %353, %354 : vector<8x64xf32>
    %356 = math.tanh %355 : vector<8x64xf32>
    %357 = arith.mulf %352, %356 : vector<8x64xf32>
    %358 = arith.truncf %357 : vector<8x64xf32> to vector<8x64xbf16>
    %c0_98 = arith.constant 0 : index
    %c0_99 = arith.constant 0 : index
    %359 = vector.load %arg4[%c0_98, %c0_99] : memref<64x256xbf16, #tpu.memory_space<vmem>>, vector<64x256xbf16>
    %cst_100 = arith.constant dense<0.000000e+00> : vector<8x256xf32>
    %360 = tpu.matmul %358, %359, %cst_100 {dimension_numbers = #tpu.dot_dimension_numbers<[1], [0], [0], [1], [0, 0, 1, 1], [], []>} : vector<8x64xbf16>, vector<64x256xbf16>, vector<8x256xf32> -> vector<8x256xf32>
    %361 = arith.truncf %326 : vector<8x64xf32> to vector<8x64xbf16>
    %c0_101 = arith.constant 0 : index
    %c0_102 = arith.constant 0 : index
    %362 = vector.load %arg5[%c0_101, %c0_102] : memref<64x256xbf16, #tpu.memory_space<vmem>>, vector<64x256xbf16>
    %cst_103 = arith.constant dense<0.000000e+00> : vector<8x256xf32>
    %363 = tpu.matmul %361, %362, %cst_103 {dimension_numbers = #tpu.dot_dimension_numbers<[1], [0], [0], [1], [0, 0, 1, 1], [], []>} : vector<8x64xbf16>, vector<64x256xbf16>, vector<8x256xf32> -> vector<8x256xf32>
    %364 = arith.addf %360, %363 : vector<8x256xf32>
    %365 = arith.addf %364, %6 : vector<8x256xf32>
    %366 = vector.extract_strided_slice %365 {offsets = [0, 0], sizes = [8, 64], strides = [1, 1]} : vector<8x256xf32> to vector<8x64xf32>
    %367 = arith.negf %366 : vector<8x64xf32>
    %368 = math.exp %367 : vector<8x64xf32>
    %cst_104 = arith.constant 1.000000e+00 : f32
    %369 = vector.broadcast %cst_104 : f32 to vector<8x64xf32>
    %370 = arith.addf %369, %368 : vector<8x64xf32>
    %371 = arith.divf %369, %370 : vector<8x64xf32>
    %372 = vector.extract_strided_slice %365 {offsets = [0, 64], sizes = [8, 64], strides = [1, 1]} : vector<8x256xf32> to vector<8x64xf32>
    %373 = arith.negf %372 : vector<8x64xf32>
    %374 = math.exp %373 : vector<8x64xf32>
    %cst_105 = arith.constant 1.000000e+00 : f32
    %375 = vector.broadcast %cst_105 : f32 to vector<8x64xf32>
    %376 = arith.addf %375, %374 : vector<8x64xf32>
    %377 = arith.divf %375, %376 : vector<8x64xf32>
    %378 = vector.extract_strided_slice %365 {offsets = [0, 128], sizes = [8, 64], strides = [1, 1]} : vector<8x256xf32> to vector<8x64xf32>
    %379 = math.tanh %378 : vector<8x64xf32>
    %380 = vector.extract_strided_slice %365 {offsets = [0, 192], sizes = [8, 64], strides = [1, 1]} : vector<8x256xf32> to vector<8x64xf32>
    %381 = arith.negf %380 : vector<8x64xf32>
    %382 = math.exp %381 : vector<8x64xf32>
    %cst_106 = arith.constant 1.000000e+00 : f32
    %383 = vector.broadcast %cst_106 : f32 to vector<8x64xf32>
    %384 = arith.addf %383, %382 : vector<8x64xf32>
    %385 = arith.divf %383, %384 : vector<8x64xf32>
    %386 = arith.mulf %377, %324 : vector<8x64xf32>
    %387 = arith.mulf %371, %379 : vector<8x64xf32>
    %388 = arith.addf %386, %387 : vector<8x64xf32>
    %389 = math.tanh %388 : vector<8x64xf32>
    %390 = arith.mulf %385, %389 : vector<8x64xf32>
    %c6 = arith.constant 6 : index
    %c0_107 = arith.constant 0 : index
    %c0_108 = arith.constant 0 : index
    %391 = vector.load %arg1[%c6, %c0_107, %c0_108] : memref<8x8x256xf32, #tpu.memory_space<vmem>>, vector<1x8x256xf32>
    %392 = vector.shape_cast %391 : vector<1x8x256xf32> to vector<8x256xf32>
    %393 = arith.truncf %357 : vector<8x64xf32> to vector<8x64xbf16>
    %c0_109 = arith.constant 0 : index
    %c0_110 = arith.constant 0 : index
    %394 = vector.load %arg3[%c0_109, %c0_110] : memref<64x256xbf16, #tpu.memory_space<vmem>>, vector<64x256xbf16>
    %cst_111 = arith.constant dense<0.000000e+00> : vector<8x256xf32>
    %395 = tpu.matmul %393, %394, %cst_111 {dimension_numbers = #tpu.dot_dimension_numbers<[1], [0], [0], [1], [0, 0, 1, 1], [], []>} : vector<8x64xbf16>, vector<64x256xbf16>, vector<8x256xf32> -> vector<8x256xf32>
    %396 = arith.addf %392, %395 : vector<8x256xf32>
    %397 = vector.extract_strided_slice %396 {offsets = [0, 0], sizes = [8, 64], strides = [1, 1]} : vector<8x256xf32> to vector<8x64xf32>
    %398 = arith.negf %397 : vector<8x64xf32>
    %399 = math.exp %398 : vector<8x64xf32>
    %cst_112 = arith.constant 1.000000e+00 : f32
    %400 = vector.broadcast %cst_112 : f32 to vector<8x64xf32>
    %401 = arith.addf %400, %399 : vector<8x64xf32>
    %402 = arith.divf %400, %401 : vector<8x64xf32>
    %403 = vector.extract_strided_slice %396 {offsets = [0, 64], sizes = [8, 64], strides = [1, 1]} : vector<8x256xf32> to vector<8x64xf32>
    %404 = arith.negf %403 : vector<8x64xf32>
    %405 = math.exp %404 : vector<8x64xf32>
    %cst_113 = arith.constant 1.000000e+00 : f32
    %406 = vector.broadcast %cst_113 : f32 to vector<8x64xf32>
    %407 = arith.addf %406, %405 : vector<8x64xf32>
    %408 = arith.divf %406, %407 : vector<8x64xf32>
    %409 = vector.extract_strided_slice %396 {offsets = [0, 128], sizes = [8, 64], strides = [1, 1]} : vector<8x256xf32> to vector<8x64xf32>
    %410 = math.tanh %409 : vector<8x64xf32>
    %411 = vector.extract_strided_slice %396 {offsets = [0, 192], sizes = [8, 64], strides = [1, 1]} : vector<8x256xf32> to vector<8x64xf32>
    %412 = arith.negf %411 : vector<8x64xf32>
    %413 = math.exp %412 : vector<8x64xf32>
    %cst_114 = arith.constant 1.000000e+00 : f32
    %414 = vector.broadcast %cst_114 : f32 to vector<8x64xf32>
    %415 = arith.addf %414, %413 : vector<8x64xf32>
    %416 = arith.divf %414, %415 : vector<8x64xf32>
    %417 = arith.mulf %408, %355 : vector<8x64xf32>
    %418 = arith.mulf %402, %410 : vector<8x64xf32>
    %419 = arith.addf %417, %418 : vector<8x64xf32>
    %420 = math.tanh %419 : vector<8x64xf32>
    %421 = arith.mulf %416, %420 : vector<8x64xf32>
    %422 = arith.truncf %421 : vector<8x64xf32> to vector<8x64xbf16>
    %c0_115 = arith.constant 0 : index
    %c0_116 = arith.constant 0 : index
    %423 = vector.load %arg4[%c0_115, %c0_116] : memref<64x256xbf16, #tpu.memory_space<vmem>>, vector<64x256xbf16>
    %cst_117 = arith.constant dense<0.000000e+00> : vector<8x256xf32>
    %424 = tpu.matmul %422, %423, %cst_117 {dimension_numbers = #tpu.dot_dimension_numbers<[1], [0], [0], [1], [0, 0, 1, 1], [], []>} : vector<8x64xbf16>, vector<64x256xbf16>, vector<8x256xf32> -> vector<8x256xf32>
    %425 = arith.truncf %390 : vector<8x64xf32> to vector<8x64xbf16>
    %c0_118 = arith.constant 0 : index
    %c0_119 = arith.constant 0 : index
    %426 = vector.load %arg5[%c0_118, %c0_119] : memref<64x256xbf16, #tpu.memory_space<vmem>>, vector<64x256xbf16>
    %cst_120 = arith.constant dense<0.000000e+00> : vector<8x256xf32>
    %427 = tpu.matmul %425, %426, %cst_120 {dimension_numbers = #tpu.dot_dimension_numbers<[1], [0], [0], [1], [0, 0, 1, 1], [], []>} : vector<8x64xbf16>, vector<64x256xbf16>, vector<8x256xf32> -> vector<8x256xf32>
    %428 = arith.addf %424, %427 : vector<8x256xf32>
    %429 = arith.addf %428, %6 : vector<8x256xf32>
    %430 = vector.extract_strided_slice %429 {offsets = [0, 0], sizes = [8, 64], strides = [1, 1]} : vector<8x256xf32> to vector<8x64xf32>
    %431 = arith.negf %430 : vector<8x64xf32>
    %432 = math.exp %431 : vector<8x64xf32>
    %cst_121 = arith.constant 1.000000e+00 : f32
    %433 = vector.broadcast %cst_121 : f32 to vector<8x64xf32>
    %434 = arith.addf %433, %432 : vector<8x64xf32>
    %435 = arith.divf %433, %434 : vector<8x64xf32>
    %436 = vector.extract_strided_slice %429 {offsets = [0, 64], sizes = [8, 64], strides = [1, 1]} : vector<8x256xf32> to vector<8x64xf32>
    %437 = arith.negf %436 : vector<8x64xf32>
    %438 = math.exp %437 : vector<8x64xf32>
    %cst_122 = arith.constant 1.000000e+00 : f32
    %439 = vector.broadcast %cst_122 : f32 to vector<8x64xf32>
    %440 = arith.addf %439, %438 : vector<8x64xf32>
    %441 = arith.divf %439, %440 : vector<8x64xf32>
    %442 = vector.extract_strided_slice %429 {offsets = [0, 128], sizes = [8, 64], strides = [1, 1]} : vector<8x256xf32> to vector<8x64xf32>
    %443 = math.tanh %442 : vector<8x64xf32>
    %444 = vector.extract_strided_slice %429 {offsets = [0, 192], sizes = [8, 64], strides = [1, 1]} : vector<8x256xf32> to vector<8x64xf32>
    %445 = arith.negf %444 : vector<8x64xf32>
    %446 = math.exp %445 : vector<8x64xf32>
    %cst_123 = arith.constant 1.000000e+00 : f32
    %447 = vector.broadcast %cst_123 : f32 to vector<8x64xf32>
    %448 = arith.addf %447, %446 : vector<8x64xf32>
    %449 = arith.divf %447, %448 : vector<8x64xf32>
    %450 = arith.mulf %441, %388 : vector<8x64xf32>
    %451 = arith.mulf %435, %443 : vector<8x64xf32>
    %452 = arith.addf %450, %451 : vector<8x64xf32>
    %453 = math.tanh %452 : vector<8x64xf32>
    %454 = arith.mulf %449, %453 : vector<8x64xf32>
    %c7 = arith.constant 7 : index
    %c0_124 = arith.constant 0 : index
    %c0_125 = arith.constant 0 : index
    %455 = vector.load %arg1[%c7, %c0_124, %c0_125] : memref<8x8x256xf32, #tpu.memory_space<vmem>>, vector<1x8x256xf32>
    %456 = vector.shape_cast %455 : vector<1x8x256xf32> to vector<8x256xf32>
    %457 = arith.truncf %421 : vector<8x64xf32> to vector<8x64xbf16>
    %c0_126 = arith.constant 0 : index
    %c0_127 = arith.constant 0 : index
    %458 = vector.load %arg3[%c0_126, %c0_127] : memref<64x256xbf16, #tpu.memory_space<vmem>>, vector<64x256xbf16>
    %cst_128 = arith.constant dense<0.000000e+00> : vector<8x256xf32>
    %459 = tpu.matmul %457, %458, %cst_128 {dimension_numbers = #tpu.dot_dimension_numbers<[1], [0], [0], [1], [0, 0, 1, 1], [], []>} : vector<8x64xbf16>, vector<64x256xbf16>, vector<8x256xf32> -> vector<8x256xf32>
    %460 = arith.addf %456, %459 : vector<8x256xf32>
    %461 = vector.extract_strided_slice %460 {offsets = [0, 0], sizes = [8, 64], strides = [1, 1]} : vector<8x256xf32> to vector<8x64xf32>
    %462 = arith.negf %461 : vector<8x64xf32>
    %463 = math.exp %462 : vector<8x64xf32>
    %cst_129 = arith.constant 1.000000e+00 : f32
    %464 = vector.broadcast %cst_129 : f32 to vector<8x64xf32>
    %465 = arith.addf %464, %463 : vector<8x64xf32>
    %466 = arith.divf %464, %465 : vector<8x64xf32>
    %467 = vector.extract_strided_slice %460 {offsets = [0, 64], sizes = [8, 64], strides = [1, 1]} : vector<8x256xf32> to vector<8x64xf32>
    %468 = arith.negf %467 : vector<8x64xf32>
    %469 = math.exp %468 : vector<8x64xf32>
    %cst_130 = arith.constant 1.000000e+00 : f32
    %470 = vector.broadcast %cst_130 : f32 to vector<8x64xf32>
    %471 = arith.addf %470, %469 : vector<8x64xf32>
    %472 = arith.divf %470, %471 : vector<8x64xf32>
    %473 = vector.extract_strided_slice %460 {offsets = [0, 128], sizes = [8, 64], strides = [1, 1]} : vector<8x256xf32> to vector<8x64xf32>
    %474 = math.tanh %473 : vector<8x64xf32>
    %475 = vector.extract_strided_slice %460 {offsets = [0, 192], sizes = [8, 64], strides = [1, 1]} : vector<8x256xf32> to vector<8x64xf32>
    %476 = arith.negf %475 : vector<8x64xf32>
    %477 = math.exp %476 : vector<8x64xf32>
    %cst_131 = arith.constant 1.000000e+00 : f32
    %478 = vector.broadcast %cst_131 : f32 to vector<8x64xf32>
    %479 = arith.addf %478, %477 : vector<8x64xf32>
    %480 = arith.divf %478, %479 : vector<8x64xf32>
    %481 = arith.mulf %472, %419 : vector<8x64xf32>
    %482 = arith.mulf %466, %474 : vector<8x64xf32>
    %483 = arith.addf %481, %482 : vector<8x64xf32>
    %484 = math.tanh %483 : vector<8x64xf32>
    %485 = arith.mulf %480, %484 : vector<8x64xf32>
    %486 = arith.truncf %485 : vector<8x64xf32> to vector<8x64xbf16>
    %c0_132 = arith.constant 0 : index
    %c0_133 = arith.constant 0 : index
    %487 = vector.load %arg4[%c0_132, %c0_133] : memref<64x256xbf16, #tpu.memory_space<vmem>>, vector<64x256xbf16>
    %cst_134 = arith.constant dense<0.000000e+00> : vector<8x256xf32>
    %488 = tpu.matmul %486, %487, %cst_134 {dimension_numbers = #tpu.dot_dimension_numbers<[1], [0], [0], [1], [0, 0, 1, 1], [], []>} : vector<8x64xbf16>, vector<64x256xbf16>, vector<8x256xf32> -> vector<8x256xf32>
    %489 = arith.truncf %454 : vector<8x64xf32> to vector<8x64xbf16>
    %c0_135 = arith.constant 0 : index
    %c0_136 = arith.constant 0 : index
    %490 = vector.load %arg5[%c0_135, %c0_136] : memref<64x256xbf16, #tpu.memory_space<vmem>>, vector<64x256xbf16>
    %cst_137 = arith.constant dense<0.000000e+00> : vector<8x256xf32>
    %491 = tpu.matmul %489, %490, %cst_137 {dimension_numbers = #tpu.dot_dimension_numbers<[1], [0], [0], [1], [0, 0, 1, 1], [], []>} : vector<8x64xbf16>, vector<64x256xbf16>, vector<8x256xf32> -> vector<8x256xf32>
    %492 = arith.addf %488, %491 : vector<8x256xf32>
    %493 = arith.addf %492, %6 : vector<8x256xf32>
    %494 = vector.extract_strided_slice %493 {offsets = [0, 0], sizes = [8, 64], strides = [1, 1]} : vector<8x256xf32> to vector<8x64xf32>
    %495 = arith.negf %494 : vector<8x64xf32>
    %496 = math.exp %495 : vector<8x64xf32>
    %cst_138 = arith.constant 1.000000e+00 : f32
    %497 = vector.broadcast %cst_138 : f32 to vector<8x64xf32>
    %498 = arith.addf %497, %496 : vector<8x64xf32>
    %499 = arith.divf %497, %498 : vector<8x64xf32>
    %500 = vector.extract_strided_slice %493 {offsets = [0, 64], sizes = [8, 64], strides = [1, 1]} : vector<8x256xf32> to vector<8x64xf32>
    %501 = arith.negf %500 : vector<8x64xf32>
    %502 = math.exp %501 : vector<8x64xf32>
    %cst_139 = arith.constant 1.000000e+00 : f32
    %503 = vector.broadcast %cst_139 : f32 to vector<8x64xf32>
    %504 = arith.addf %503, %502 : vector<8x64xf32>
    %505 = arith.divf %503, %504 : vector<8x64xf32>
    %506 = vector.extract_strided_slice %493 {offsets = [0, 128], sizes = [8, 64], strides = [1, 1]} : vector<8x256xf32> to vector<8x64xf32>
    %507 = math.tanh %506 : vector<8x64xf32>
    %508 = vector.extract_strided_slice %493 {offsets = [0, 192], sizes = [8, 64], strides = [1, 1]} : vector<8x256xf32> to vector<8x64xf32>
    %509 = arith.negf %508 : vector<8x64xf32>
    %510 = math.exp %509 : vector<8x64xf32>
    %cst_140 = arith.constant 1.000000e+00 : f32
    %511 = vector.broadcast %cst_140 : f32 to vector<8x64xf32>
    %512 = arith.addf %511, %510 : vector<8x64xf32>
    %513 = arith.divf %511, %512 : vector<8x64xf32>
    %514 = arith.mulf %505, %452 : vector<8x64xf32>
    %515 = arith.mulf %499, %507 : vector<8x64xf32>
    %516 = arith.addf %514, %515 : vector<8x64xf32>
    %517 = math.tanh %516 : vector<8x64xf32>
    %518 = arith.mulf %513, %517 : vector<8x64xf32>
    %c0_141 = arith.constant 0 : index
    %c0_142 = arith.constant 0 : index
    %519 = vector.load %arg2[%c0_141, %c0_142] : memref<8x5xf32, #tpu.memory_space<vmem>>, vector<8x5xf32>
    %c0_143 = arith.constant 0 : index
    %c0_144 = arith.constant 0 : index
    %520 = vector.load %arg7[%c0_143, %c0_144] : memref<5x32xf32, #tpu.memory_space<vmem>>, vector<5x32xf32>
    %cst_145 = arith.constant dense<0.000000e+00> : vector<8x32xf32>
    %521 = tpu.matmul %519, %520, %cst_145 {dimension_numbers = #tpu.dot_dimension_numbers<[1], [0], [0], [1], [0, 0, 1, 1], [], []>} : vector<8x5xf32>, vector<5x32xf32>, vector<8x32xf32> -> vector<8x32xf32>
    %c0_146 = arith.constant 0 : index
    %c0_147 = arith.constant 0 : index
    %522 = vector.load %arg8[%c0_146, %c0_147] : memref<1x32xf32, #tpu.memory_space<vmem>>, vector<1x32xf32>
    %523 = vector.broadcast %522 : vector<1x32xf32> to vector<8x32xf32>
    %524 = arith.addf %521, %523 : vector<8x32xf32>
    %cst_148 = arith.constant 0.000000e+00 : f32
    %525 = vector.broadcast %cst_148 : f32 to vector<8x32xf32>
    %526 = arith.maximumf %524, %525 : vector<8x32xf32>
    %c0_149 = arith.constant 0 : index
    %c0_150 = arith.constant 0 : index
    %527 = vector.load %arg9[%c0_149, %c0_150] : memref<32x16xf32, #tpu.memory_space<vmem>>, vector<32x16xf32>
    %cst_151 = arith.constant dense<0.000000e+00> : vector<8x16xf32>
    %528 = tpu.matmul %526, %527, %cst_151 {dimension_numbers = #tpu.dot_dimension_numbers<[1], [0], [0], [1], [0, 0, 1, 1], [], []>} : vector<8x32xf32>, vector<32x16xf32>, vector<8x16xf32> -> vector<8x16xf32>
    %c0_152 = arith.constant 0 : index
    %c0_153 = arith.constant 0 : index
    %529 = vector.load %arg10[%c0_152, %c0_153] : memref<1x16xf32, #tpu.memory_space<vmem>>, vector<1x16xf32>
    %530 = vector.broadcast %529 : vector<1x16xf32> to vector<8x16xf32>
    %531 = arith.addf %528, %530 : vector<8x16xf32>
    %cst_154 = arith.constant 0.000000e+00 : f32
    %532 = vector.broadcast %cst_154 : f32 to vector<8x16xf32>
    %533 = arith.maximumf %531, %532 : vector<8x16xf32>
    %c0_155 = arith.constant 0 : index
    %c0_156 = arith.constant 0 : index
    %534 = vector.load %arg11[%c0_155, %c0_156] : memref<64x32xf32, #tpu.memory_space<vmem>>, vector<64x32xf32>
    %cst_157 = arith.constant dense<0.000000e+00> : vector<8x32xf32>
    %535 = tpu.matmul %518, %534, %cst_157 {dimension_numbers = #tpu.dot_dimension_numbers<[1], [0], [0], [1], [0, 0, 1, 1], [], []>} : vector<8x64xf32>, vector<64x32xf32>, vector<8x32xf32> -> vector<8x32xf32>
    %c0_158 = arith.constant 0 : index
    %c0_159 = arith.constant 0 : index
    %536 = vector.load %arg12[%c0_158, %c0_159] : memref<16x32xf32, #tpu.memory_space<vmem>>, vector<16x32xf32>
    %cst_160 = arith.constant dense<0.000000e+00> : vector<8x32xf32>
    %537 = tpu.matmul %533, %536, %cst_160 {dimension_numbers = #tpu.dot_dimension_numbers<[1], [0], [0], [1], [0, 0, 1, 1], [], []>} : vector<8x16xf32>, vector<16x32xf32>, vector<8x32xf32> -> vector<8x32xf32>
    %538 = arith.addf %535, %537 : vector<8x32xf32>
    %c0_161 = arith.constant 0 : index
    %c0_162 = arith.constant 0 : index
    %539 = vector.load %arg13[%c0_161, %c0_162] : memref<1x32xf32, #tpu.memory_space<vmem>>, vector<1x32xf32>
    %540 = vector.broadcast %539 : vector<1x32xf32> to vector<8x32xf32>
    %541 = arith.addf %538, %540 : vector<8x32xf32>
    %cst_163 = arith.constant 0.000000e+00 : f32
    %542 = vector.broadcast %cst_163 : f32 to vector<8x32xf32>
    %543 = arith.maximumf %541, %542 : vector<8x32xf32>
    %c0_164 = arith.constant 0 : index
    %c0_165 = arith.constant 0 : index
    %544 = vector.load %arg14[%c0_164, %c0_165] : memref<1x32xf32, #tpu.memory_space<vmem>>, vector<1x32xf32>
    %545 = vector.broadcast %544 : vector<1x32xf32> to vector<8x32xf32>
    %546 = arith.mulf %543, %545 : vector<8x32xf32>
    %cst_166 = arith.constant dense<0.000000e+00> : vector<8xf32>
    %547 = vector.multi_reduction <add>, %546, %cst_166 [1] : vector<8x32xf32> to vector<8xf32>
    %548 = vector.shape_cast %547 : vector<8xf32> to vector<8x1xf32>
    %c0_167 = arith.constant 0 : index
    %c0_168 = arith.constant 0 : index
    %549 = vector.load %arg15[%c0_167, %c0_168] : memref<1x1xf32, #tpu.memory_space<vmem>>, vector<1x1xf32>
    %550 = vector.broadcast %549 : vector<1x1xf32> to vector<8x1xf32>
    %551 = arith.addf %548, %550 : vector<8x1xf32>
    %c0_169 = arith.constant 0 : index
    %c0_170 = arith.constant 0 : index
    %552 = vector.load %arg16[%c0_169, %c0_170] : memref<8x1xf32, #tpu.memory_space<vmem>>, vector<8x1xf32>
    tpu.vector_store %arg16[%c0_169, %c0_170], %551 {strides = array<i32>} : memref<8x1xf32, #tpu.memory_space<vmem>>, vector<8x1xf32>,
    return
  }
  func.func @transform_0(%arg0: i32) -> (i32, i32, i32) {
    %c0_i32 = arith.constant 0 : i32
    %c0_i32_0 = arith.constant 0 : i32
    %c0_i32_1 = arith.constant 0 : i32
    return %c0_i32, %arg0, %c0_i32_0 : i32, i32, i32
  }
  func.func @transform_1(%arg0: i32) -> (i32, i32) {
    %c0_i32 = arith.constant 0 : i32
    %c0_i32_0 = arith.constant 0 : i32
    return %arg0, %c0_i32 : i32, i32
  }
  func.func @transform_2(%arg0: i32) -> (i32, i32) {
    %c0_i32 = arith.constant 0 : i32
    %c0_i32_0 = arith.constant 0 : i32
    %c0_i32_1 = arith.constant 0 : i32
    return %c0_i32, %c0_i32_0 : i32, i32
  }
  func.func @transform_3(%arg0: i32) -> (i32, i32) {
    %c0_i32 = arith.constant 0 : i32
    %c0_i32_0 = arith.constant 0 : i32
    %c0_i32_1 = arith.constant 0 : i32
    return %c0_i32, %c0_i32_0 : i32, i32
  }
  func.func @transform_4(%arg0: i32) -> (i32, i32) {
    %c0_i32 = arith.constant 0 : i32
    %c0_i32_0 = arith.constant 0 : i32
    %c0_i32_1 = arith.constant 0 : i32
    return %c0_i32, %c0_i32_0 : i32, i32
  }
  func.func @transform_5(%arg0: i32) -> (i32, i32) {
    %c0_i32 = arith.constant 0 : i32
    %c0_i32_0 = arith.constant 0 : i32
    %c0_i32_1 = arith.constant 0 : i32
    return %c0_i32, %c0_i32_0 : i32, i32
  }
  func.func @transform_6(%arg0: i32) -> (i32, i32) {
    %c0_i32 = arith.constant 0 : i32
    %c0_i32_0 = arith.constant 0 : i32
    %c0_i32_1 = arith.constant 0 : i32
    return %c0_i32, %c0_i32_0 : i32, i32
  }
  func.func @transform_7(%arg0: i32) -> (i32, i32) {
    %c0_i32 = arith.constant 0 : i32
    %c0_i32_0 = arith.constant 0 : i32
    %c0_i32_1 = arith.constant 0 : i32
    return %c0_i32, %c0_i32_0 : i32, i32
  }
  func.func @transform_8(%arg0: i32) -> (i32, i32) {
    %c0_i32 = arith.constant 0 : i32
    %c0_i32_0 = arith.constant 0 : i32
    %c0_i32_1 = arith.constant 0 : i32
    return %c0_i32, %c0_i32_0 : i32, i32
  }
  func.func @transform_9(%arg0: i32) -> (i32, i32) {
    %c0_i32 = arith.constant 0 : i32
    %c0_i32_0 = arith.constant 0 : i32
    %c0_i32_1 = arith.constant 0 : i32
    return %c0_i32, %c0_i32_0 : i32, i32
  }
  func.func @transform_10(%arg0: i32) -> (i32, i32) {
    %c0_i32 = arith.constant 0 : i32
    %c0_i32_0 = arith.constant 0 : i32
    %c0_i32_1 = arith.constant 0 : i32
    return %c0_i32, %c0_i32_0 : i32, i32
  }
  func.func @transform_11(%arg0: i32) -> (i32, i32) {
    %c0_i32 = arith.constant 0 : i32
    %c0_i32_0 = arith.constant 0 : i32
    %c0_i32_1 = arith.constant 0 : i32
    return %c0_i32, %c0_i32_0 : i32, i32
  }
  func.func @transform_12(%arg0: i32) -> (i32, i32) {
    %c0_i32 = arith.constant 0 : i32
    %c0_i32_0 = arith.constant 0 : i32
    %c0_i32_1 = arith.constant 0 : i32
    return %c0_i32, %c0_i32_0 : i32, i32
  }
  func.func @transform_13(%arg0: i32) -> (i32, i32) {
    %c0_i32 = arith.constant 0 : i32
    %c0_i32_0 = arith.constant 0 : i32
    %c0_i32_1 = arith.constant 0 : i32
    return %c0_i32, %c0_i32_0 : i32, i32
  }
  func.func @transform_14(%arg0: i32) -> (i32, i32) {
    %c0_i32 = arith.constant 0 : i32
    %c0_i32_0 = arith.constant 0 : i32
    %c0_i32_1 = arith.constant 0 : i32
    return %c0_i32, %c0_i32_0 : i32, i32
  }
  func.func @transform_15(%arg0: i32) -> (i32, i32) {
    %c0_i32 = arith.constant 0 : i32
    %c0_i32_0 = arith.constant 0 : i32
    return %arg0, %c0_i32 : i32, i32
  }
}

</mosaic_0001>

<bundles_post_ra>
// kernel: tpu_custom_call.1
= control target key start
LH: loop header
LB: loop body
LE: loop exit
PB: predicated region body
PF: predicated region fallthrough
CT: control target
= control target key end

     0   :  { %s3477_s0 = inlined_call_operand.vmem [shape: f32[8,8,256], index: 0, kind: input, shape index: {}]   ;;  %s3478_s1 = inlined_call_operand.hbm [shape: f32[8,5], index: 1, kind: input, shape index: {}]   ;;  %s3479_s2 = inlined_call_operand.hbm [shape: bf16[64,256], index: 2, kind: input, shape index: {}]   ;;  %s3480_s3 = inlined_call_operand.hbm [shape: bf16[64,256], index: 3, kind: input, shape index: {}]   ;;  %s3481_s4 = inlined_call_operand.hbm [shape: bf16[64,256], index: 4, kind: input, shape index: {}]   ;;  %s3482_s5 = inlined_call_operand.hbm [shape: f32[1,256], index: 5, kind: input, shape index: {}]   ;;  %s3483_s6 = inlined_call_operand.hbm [shape: f32[5,32], index: 6, kind: input, shape index: {}]   ;;  %s3484_s7 = inlined_call_operand.hbm [shape: f32[1,32], index: 7, kind: input, shape index: {}]   ;;  %s3485_s8 = inlined_call_operand.vmem [shape: f32[32,16], index: 8, kind: input, shape index: {}]   ;;  %s3486_s9 = inlined_call_operand.vmem [shape: f32[1,16], index: 9, kind: input, shape index: {}]   ;;  %s3487_s10 = inlined_call_operand.vmem [shape: f32[64,32], index: 10, kind: input, shape index: {}]   ;;  %s3488_s11 = inlined_call_operand.hbm [shape: f32[16,32], index: 11, kind: input, shape index: {}]   ;;  %s3489_s12 = inlined_call_operand.vmem [shape: f32[1,32], index: 12, kind: input, shape index: {}]   ;;  %s3490_s13 = inlined_call_operand.vmem [shape: f32[1,32], index: 13, kind: input, shape index: {}]   ;;  %s3491_s14 = inlined_call_operand.<no memory space> [shape: f32[1,1], index: 14, kind: input, shape index: {}]   ;;  %s3492_s15 = inlined_call_operand.vmem [shape: f32[8,1], index: 15, kind: output, shape index: {}]  }
   0x1   :  { %v20_v0 = vstv %s3491_s14 }
   0x2   :  { %21 = vst [vmem:[#allocation2] sm:$0x1] %v20_v0 }
   0x3   :  { %22 = vsyncpa [#allocation4], 0 }
   0x4   :  { %23 = vsyncpa [#allocation6], 0 }
   0x5   :  { %24 = vsyncpa [#allocation9], 0 }
   0x6   :  { %25 = vsyncpa [#allocation12], 0 }
   0x7   :  { %26 = vsyncpa [#allocation15], 0  ;;  %s2781_s20 = smov [#allocation5]  }
   0x8   :  { %s44_s21 = sshll.u32 %s2781_s20, 4  ;;  %s45_s21 = int_to_ptr.vmem [resolvable:$true] %s44_s21 }
   0x9   :  { %s2619_s22 = scalar_lea.vmem %s45_s21, 1024  ;;  %p2624_p1 = scmp.lt.s32.totalorder %s45_s21, %s45_s21 }
   0xa   :  { %p2620_p0 = scmp.ne.s32.totalorder %s45_s21, %s2619_s22  ;;  %p2625_p2 = scmp.lt.s32.totalorder %s2619_s22, %s2619_s22 }
   0xc   :  { %p2626_p3 = por %p2625_p2, %p2624_p1 }
   0xe   :  { %p2627_p4 = pnand %p2626_p3, %p2620_p0 }
  0x10   :  { %2630 = shalt.err (!%p2627_p4)
}
  0x11   :  { %s2782_s23 = smov 128   ;;  %s2783_s24 = smov 8  }
  0x12   :  { %50 = dma.hbm_to_vmem [thread:$0]  %s3479_s2, 1024, %s45_s21, [#allocation6], %s2782_s23, %s2782_s23, %s2783_s24  }
  0x13   :  { %s2784_s26 = smov [#allocation8]   ;;  %s2785_s28 = smov [#allocation11]  }
  0x14   :  { %s68_s27 = sshll.u32 %s2784_s26, 4  ;;  %s91_s29 = sshll.u32 %s2785_s28, 4  ;;  %s69_s27 = int_to_ptr.vmem [resolvable:$true] %s68_s27  ;;  %s92_s29 = int_to_ptr.vmem [resolvable:$true] %s91_s29 }
  0x15   :  { %s2639_s30 = scalar_lea.vmem %s69_s27, 1024  ;;  %p2644_p6 = scmp.lt.s32.totalorder %s69_s27, %s69_s27 }
  0x16   :  { %p2640_p5 = scmp.ne.s32.totalorder %s69_s27, %s2639_s30  ;;  %p2645_p7 = scmp.lt.s32.totalorder %s2639_s30, %s2639_s30 }
  0x18   :  { %p2646_p8 = por %p2645_p7, %p2644_p6 }
  0x1a   :  { %p2647_p9 = pnand %p2646_p8, %p2640_p5 }
  0x1c   :  { %2650 = shalt.err (!%p2647_p9)
}
  0x1d   :  { %74 = dma.hbm_to_vmem [thread:$0]  %s3481_s4, 1024, %s69_s27, [#allocation9], %s2782_s23, %s2782_s23, %s2783_s24  }
  0x1e   :  { %s2659_s2 = scalar_lea.vmem %s92_s29, 128  ;;  %p2664_p11 = scmp.lt.s32.totalorder %s92_s29, %s92_s29 }
  0x1f   :  { %p2660_p10 = scmp.ne.s32.totalorder %s92_s29, %s2659_s2  ;;  %p2665_p12 = scmp.lt.s32.totalorder %s2659_s2, %s2659_s2 }
  0x21   :  { %p2666_p13 = por %p2665_p12, %p2664_p11 }
  0x23   :  { %p2667_p0 = pnand %p2666_p13, %p2660_p10 }
  0x25   :  { %2670 = shalt.err (!%p2667_p0)
}
  0x26   :  { %94 = dma.hbm_to_vmem [thread:$0]  %s3483_s6, 128, %s92_s29, [#allocation12]  }
  0x27   :  { %s2786_s20 = smov [#allocation3]   ;;  %s2787_s22 = smov [#allocation7]  }
  0x28   :  { %s35_s21 = sshll.u32 %s2786_s20, 4  ;;  %s56_s14 = sshll.u32 %s2787_s22, 4  ;;  %s36_s21 = int_to_ptr.vmem [resolvable:$true] %s35_s21  ;;  %s57_s14 = int_to_ptr.vmem [resolvable:$true] %s56_s14 }
  0x29   :  { %s2679_s25 = scalar_lea.vmem %s36_s21, 128  ;;  %p2684_p2 = scmp.lt.s32.totalorder %s36_s21, %s36_s21 }
  0x2a   :  { %p2680_p1 = scmp.ne.s32.totalorder %s36_s21, %s2679_s25  ;;  %p2685_p3 = scmp.lt.s32.totalorder %s2679_s25, %s2679_s25 }
  0x2c   :  { %p2686_p4 = por %p2685_p3, %p2684_p2 }
  0x2e   :  { %p2687_p5 = pnand %p2686_p4, %p2680_p1 }
  0x30   :  { %2690 = shalt.err (!%p2687_p5)
}
  0x31   :  { %38 = dma.hbm_to_vmem [thread:$0]  %s3478_s1, 128, %s36_s21, [#allocation4]  }
  0x32   :  { %s2699_s27 = scalar_lea.vmem %s57_s14, 1024  ;;  %p2704_p7 = scmp.lt.s32.totalorder %s57_s14, %s57_s14 }
  0x33   :  { %p2700_p6 = scmp.ne.s32.totalorder %s57_s14, %s2699_s27  ;;  %p2705_p8 = scmp.lt.s32.totalorder %s2699_s27, %s2699_s27 }
  0x35   :  { %p2706_p9 = por %p2705_p8, %p2704_p7 }
  0x37   :  { %p2707_p10 = pnand %p2706_p9, %p2700_p6 }
  0x39   :  { %2710 = shalt.err (!%p2707_p10)
}
  0x3a   :  { %62 = dma.hbm_to_vmem [thread:$0]  %s3480_s3, 1024, %s57_s14, [#allocation6], %s2782_s23, %s2782_s23, %s2783_s24  }
  0x3b   :  { %s2788_s29 = smov [#allocation10]   ;;  %s2789_s16 = smov [#allocation13]  }
  0x3c   :  { %s81_s30 = sshll.u32 %s2788_s29, 4  ;;  %s101_s1 = sshll.u32 %s2789_s16, 4  ;;  %s82_s30 = int_to_ptr.vmem [resolvable:$true] %s81_s30  ;;  %s102_s1 = int_to_ptr.vmem [resolvable:$true] %s101_s1 }
  0x3d   :  { %s2719_s17 = scalar_lea.vmem %s82_s30, 32  ;;  %p2724_p12 = scmp.lt.s32.totalorder %s82_s30, %s82_s30 }
  0x3e   :  { %p2720_p11 = scmp.ne.s32.totalorder %s82_s30, %s2719_s17  ;;  %p2725_p13 = scmp.lt.s32.totalorder %s2719_s17, %s2719_s17 }
  0x40   :  { %p2726_p0 = por %p2725_p13, %p2724_p12 }
  0x42   :  { %p2727_p1 = pnand %p2726_p0, %p2720_p11 }
  0x44   :  { %2730 = shalt.err (!%p2727_p1)
}
  0x45   :  { %84 = dma.hbm_to_vmem [thread:$0]  %s3482_s5, 32, %s82_s30, [#allocation9]  }
  0x46   :  { %s2739_s19 = scalar_lea.vmem %s102_s1, 16  ;;  %s2743_s3 = scalar_lea.vmem %s102_s1, 32 }
  0x47   :  { %p2740_p2 = scmp.ne.s32.totalorder %s102_s1, %s2739_s19  ;;  %p2744_p3 = scmp.lt.s32.totalorder %s102_s1, %s102_s1 }
  0x48   :  { %p2745_p4 = scmp.lt.s32.totalorder %s2743_s3, %s2739_s19 }
  0x4a   :  { %p2746_p5 = por %p2745_p4, %p2744_p3 }
  0x4c   :  { %p2747_p6 = pnand %p2746_p5, %p2740_p2 }
  0x4e   :  { %2750 = shalt.err (!%p2747_p6)
}
  0x4f   :  { %104 = dma.hbm_to_vmem [thread:$0]  %s3484_s7, 16, %s102_s1, [#allocation12]  }
  0x50   :  { %s2790_s22 = smov [#allocation14]  }
  0x51   :  { %s116_s14 = sshll.u32 %s2790_s22, 4  ;;  %s117_s14 = int_to_ptr.vmem [resolvable:$true] %s116_s14 }
  0x52   :  { %s2759_s25 = scalar_lea.vmem %s117_s14, 256  ;;  %p2764_p8 = scmp.lt.s32.totalorder %s117_s14, %s117_s14 }
  0x53   :  { %p2760_p7 = scmp.ne.s32.totalorder %s117_s14, %s2759_s25  ;;  %p2765_p9 = scmp.lt.s32.totalorder %s2759_s25, %s2759_s25 }
  0x55   :  { %p2766_p10 = por %p2765_p9, %p2764_p8 }
  0x57   :  { %p2767_p11 = pnand %p2766_p10, %p2760_p7 }
  0x59   :  { %2770 = shalt.err (!%p2767_p11)
}
  0x5a   :  { %122 = dma.hbm_to_vmem [thread:$0]  %s3488_s11, 256, %s117_s14, [#allocation15], %s2782_s23, %s2782_s23, %s2783_s24  }
  0x5b   :  { %2771 = dma.done.wait [#allocation4], 128  }
  0x5c   :  { %2772 = vsyncadd [#allocation4], 4294967168 }
  0x5d   :  { %2773 = dma.done.wait [#allocation6], 2048  }
  0x5e   :  { %2774 = vsyncadd [#allocation6], 4294965248 }
  0x5f   :  { %2775 = dma.done.wait [#allocation9], 1056  }
  0x60   :  { %2776 = vsyncadd [#allocation9], 4294966240 }
  0x61   :  { %2777 = dma.done.wait [#allocation12], 144  }
  0x62   :  { %2778 = vsyncadd [#allocation12], 4294967152 }
  0x63   :  { %2779 = dma.done.wait [#allocation15], 256  }
  0x64   :  { %2780 = vsyncadd [#allocation15], 4294967040  ;;  %v2791_v1 = vmov 0   ;;  %v2916_v2 = vld [vmem:[#allocation5 + $0x34] ss:$8 sps:$4 sm:$0xff]   ;;  %s2792_s26 = smov 64   ;;  %v156_v55 = vlaneseq }
  0x65   :  { %252 = vmatprep.mubr.bf16.mxu0 %v2791_v1  ;;  %374 = vmatprep.mubr.bf16.mxu1 %v2791_v1  ;;  %v2918_v3 = vld [vmem:[#allocation5 + $0x30] ss:$8 sps:$4 sm:$0xff]   ;;  %v2921_v4 = vld [vmem:[#allocation5 + $0x24] ss:$8 sps:$4 sm:$0xff]   ;;  %v2924_v5 = vld [vmem:[#allocation5 + $0x20] ss:$8 sps:$4 sm:$0xff]  }
  0x66   :  { %228 = vmatprep.subr.bf16.mxu0 %v2916_v2  ;;  %v2927_v6 = vld [vmem:[#allocation5 + $0x14] ss:$8 sps:$4 sm:$0xff]   ;;  %v2929_v7 = vld [vmem:[#allocation5 + $0x10] ss:$8 sps:$4 sm:$0xff]   ;;  %v2931_v8 = vld [vmem:[#allocation5 + $0x4] ss:$8 sps:$4 sm:$0xff]  }
  0x67   :  { %229 = vmatpush1.bf16.msra.mxu0 %v2918_v3  ;;  %v2936_v9 = vld [vmem:[#allocation5] ss:$8 sps:$4 sm:$0xff]   ;;  %v166_v10 = vld [vmem:[%s3477_s0] sm:$0xff]  ;;  %v2953_v26 = vld [vmem:[#allocation8 + $0x24] ss:$8 sps:$4 sm:$0xff]   ;;  %vm216_vm0 = vcmask 523264  }
  0x68   :  { %230 = vmatprep.subr.bf16.mxu0 %v2921_v4  ;;  %v167_v17 = vld [vmem:[%s3477_s0 + $0x8] sm:$0xff]  ;;  %v2951_v25 = vld [vmem:[#allocation8 + $0x30] ss:$8 sps:$4 sm:$0xff]   ;;  %v157_v56 = vshrl.u32 %v156_v55, 7  ;;  %v2211_v59 = vld [vmem:[%s3477_s0 + $0x10] sm:$0xff]  ;;  %vm1823_vm1 = vcmask 1044480  }
  0x69   :  { %v2949_v24 = vld [vmem:[#allocation8 + $0x34] ss:$8 sps:$4 sm:$0xff]   ;;  %v2959_v28 = vld [vmem:[#allocation8 + $0x20] ss:$8 sps:$4 sm:$0xff]   ;;  %v2961_v29 = vld [vmem:[#allocation7 + $0x30] ss:$8 sps:$4 sm:$0xff]  }
  0x6a   :  { %350 = vmatprep.subr.bf16.mxu1 %v2949_v24  ;;  %v2956_v27 = vld [vmem:[#allocation7 + $0x34] ss:$8 sps:$4 sm:$0xff]   ;;  %v2963_v30 = vld [vmem:[#allocation7 + $0x24] ss:$8 sps:$4 sm:$0xff]   ;;  %v2970_v32 = vld [vmem:[#allocation7 + $0x20] ss:$8 sps:$4 sm:$0xff]  }
  0x6b   :  { %231 = vmatpush1.bf16.msra.mxu0 %v2924_v5  ;;  %351 = vmatpush1.bf16.msra.mxu1 %v2951_v25  ;;  %v2966_v31 = vld [vmem:[#allocation8 + $0x14] ss:$8 sps:$4 sm:$0xff]   ;;  %v2976_v34 = vld [vmem:[#allocation8 + $0x10] ss:$8 sps:$4 sm:$0xff]   ;;  %v2979_v35 = vld [vmem:[#allocation8 + $0x4] ss:$8 sps:$4 sm:$0xff]  }
  0x6c   :  { %232 = vmatprep.subr.bf16.mxu0 %v2927_v6  ;;  %352 = vmatprep.subr.bf16.mxu1 %v2953_v26  ;;  %v2973_v33 = vld [vmem:[#allocation7 + $0x14] ss:$8 sps:$4 sm:$0xff]   ;;  %v2982_v36 = vld [vmem:[#allocation7 + $0x10] ss:$8 sps:$4 sm:$0xff]   ;;  %v2985_v37 = vld [vmem:[#allocation7 + $0x4] ss:$8 sps:$4 sm:$0xff]  }
  0x6d   :  { %v2988_v38 = vld [vmem:[#allocation8] ss:$8 sps:$4 sm:$0xff]   ;;  %v158_v57 = vsub.s32 0, %v157_v56  ;;  %vm2794_vm2 = vmmov 0   ;;  %vm1819_vm3 = vcmask 39936   ;;  %vm1909_vm4 = vcmask 261120  }
  0x6e   :  { %v2992_v39 = vld [vmem:[#allocation7] ss:$8 sps:$4 sm:$0xff]   ;;  %vm1994_vm5 = vcmask 130048   ;;  %vm2171_vm6 = vcmask 7168  }
  0x6f   :  { %233 = vmatpush1.bf16.msra.mxu0 %v2929_v7  ;;  %353 = vmatpush1.bf16.msra.mxu1 %v2959_v28  ;;  %v154_v58 = vld [vmem:[#allocation10] sm:$0x3] }
  0x70   :  { %234 = vmatprep.subr.bf16.mxu0 %v2931_v8  ;;  %354 = vmatprep.subr.bf16.mxu1 %v2966_v31  ;;  %v3036_v60 = vrot.slane %v154_v58, %v158_v57 }
  0x73   :  { %235 = vmatpush1.bf16.msra.mxu0 %v2936_v9  ;;  %355 = vmatpush1.bf16.msra.mxu1 %v2976_v34 }
  0x74   :  { %437 = vmatprep.subr.bf16.mxu0 %v2956_v27  ;;  %356 = vmatprep.subr.bf16.mxu1 %v2979_v35 }
  0x76   :  { %253 = vmatmul.mubr.bf16.vlgmr.msra.gmra.mxu0 %v2791_v1 }
  0x77   :  { %461 = vmatprep.mubr.bf16.mxu0 %v2791_v1  ;;  %438 = vmatpush1.bf16.msra.mxu0 %v2961_v29 }
  0x78   :  { %439 = vmatprep.subr.bf16.mxu0 %v2963_v30  ;;  %357 = vmatpush1.bf16.msra.mxu1 %v2988_v38 }
  0x79   :  { %505 = vmatprep.subr.bf16.mxu1 %v2916_v2 }
  0x7b   :  { %440 = vmatpush1.bf16.msra.mxu0 %v2970_v32  ;;  %375 = vmatmul.mubr.bf16.vlgmr.msra.gmra.mxu1 %v2791_v1 }
  0x7c   :  { %441 = vmatprep.subr.bf16.mxu0 %v2973_v33  ;;  %506 = vmatpush1.bf16.msra.mxu1 %v2918_v3 }
  0x7d   :  { %529 = vmatprep.mubr.bf16.mxu1 %v2791_v1  ;;  %507 = vmatprep.subr.bf16.mxu1 %v2921_v4 }
  0x7f   :  { %442 = vmatpush1.bf16.msra.mxu0 %v2982_v36 }
  0x80   :  { %443 = vmatprep.subr.bf16.mxu0 %v2985_v37  ;;  %508 = vmatpush1.bf16.msra.mxu1 %v2924_v5 }
  0x81   :  { %509 = vmatprep.subr.bf16.mxu1 %v2927_v6 }
  0x83   :  { %444 = vmatpush1.bf16.msra.mxu0 %v2992_v39 }
  0x84   :  { %578 = vmatprep.subr.bf16.mxu0 %v2949_v24  ;;  %510 = vmatpush1.bf16.msra.mxu1 %v2929_v7 }
  0x85   :  { %511 = vmatprep.subr.bf16.mxu1 %v2931_v8 }
  0x88   :  { %512 = vmatpush1.bf16.msra.mxu1 %v2936_v9 }
  0x89   :  { %625 = vmatprep.subr.bf16.mxu1 %v2956_v27 }
 0x136   :  { %v254_v11 = vpop.f32.mrf.mxu0 }
 0x137   :  { %v261_v12 = vadd.f32 %v254_v11, %v166_v10 }
 0x138   :  { %v256_v13 = vpop.f32.mrf.mxu0 }
 0x139   :  { %v2190_v14 = vmul.f32 -1.442695, %v261_v12  ;;  %v262_v18 = vadd.f32 %v256_v13, %v167_v17 }
 0x13a   :  { %v258_v15 = vpop.f32.mrf.mxu0 }
 0x13b   :  { %2395 = vpow2.f32 %v2190_v14  ;;  %v2191_v40 = vmul.f32 -1.442695, %v262_v18  ;;  %v376_v50 = vpop.f32.mrf.mxu1 }
 0x13c   :  { %v259_v16 = vpop.f32.mrf.mxu0  ;;  %2397 = vtanh.f32 %v262_v18 }
 0x13d   :  { %v378_v51 = vpop.f32.mrf.mxu1 }
 0x13f   :  { %v380_v52 = vpop.f32.mrf.mxu1 }
 0x141   :  { %v381_v53 = vpop.f32.mrf.mxu1 }
 0x148   :  { %v2396_v19 = vpop.eup %2395 }
 0x149   :  { %v266_v20 = vadd.f32 1.0, %v2396_v19  ;;  %v2398_v21 = vpop.eup %2397  ;;  %v162_v19 = vsub.s32 1, %v157_v56 }
 0x14b   :  { %2399 = vrcp.f32 %v266_v20  ;;  %v3039_v20 = vrot.slane %v154_v58, %v162_v19 }
 0x14c   :  { %2401 = vpow2.f32 %v2191_v40 }
 0x158   :  { %v2400_v22 = vpop.eup %2399 }
 0x159   :  { %v277_v23 = vmul.f32 %v2400_v22, %v2398_v21  ;;  %v2402_v41 = vpop.eup %2401  ;;  %v276_v43 = vmul.f32 0.0, %v2400_v22 }
 0x15a   :  { %v273_v42 = vadd.f32 1.0, %v2402_v41  ;;  %v2212_v41 = vld [vmem:[%s3477_s0 + $0x18] sm:$0xff] }
 0x15b   :  { %279 = vrot.lane.b32.xlu0 %v277_v23, %s2792_s26 }
 0x15c   :  { %2403 = vrcp.f32 %v273_v42 }
 0x169   :  { %v2404_v46 = vpop.eup %2403 }
 0x1cd   :  { %v280_v44 = vpop.permute.xlu0 %279 }
 0x1ce   :  { %v3009_v45 = vadd.f32 %v280_v44, %v276_v43 }
 0x1d0   :  { %2405 = vtanh.f32 %v3009_v45 }
 0x1dd   :  { %v2406_v47 = vpop.eup %2405 }
 0x1de   :  { %v284_v48 = vmul.f32 %v2406_v47, %v2404_v46 }
 0x1e0   :  { %v285_v49 = vpack.c.bf16 %v284_v48, %v284_v48 }
 0x1e2   :  { %384 = vrot.lane.b32.xlu0 %v285_v49, %s2792_s26 }
 0x254   :  { %v385_v54 = vpop.permute.xlu0 %384 }
 0x255   :  { %2208 = vmatmul.mubr.msk.bf16.vlgmr.msra.gmra.mxu0 %vm216_vm0, %v385_v54  ;;  %2213 = vmatmul.mubr.msk.bf16.vlgmr.msra.gmra.mxu1 %vm216_vm0, %v385_v54 }
 0x256   :  { %579 = vmatpush1.bf16.msra.mxu0 %v2951_v25  ;;  %626 = vmatpush1.bf16.msra.mxu1 %v2961_v29 }
 0x257   :  { %580 = vmatprep.subr.bf16.mxu0 %v2953_v26  ;;  %627 = vmatprep.subr.bf16.mxu1 %v2963_v30 }
 0x258   :  { %602 = vmatprep.mubr.bf16.mxu0 %v2791_v1  ;;  %649 = vmatprep.mubr.bf16.mxu1 %v2791_v1 }
 0x25a   :  { %581 = vmatpush1.bf16.msra.mxu0 %v2959_v28  ;;  %628 = vmatpush1.bf16.msra.mxu1 %v2970_v32 }
 0x25b   :  { %582 = vmatprep.subr.bf16.mxu0 %v2966_v31  ;;  %629 = vmatprep.subr.bf16.mxu1 %v2973_v33 }
 0x25e   :  { %583 = vmatpush1.bf16.msra.mxu0 %v2976_v34  ;;  %630 = vmatpush1.bf16.msra.mxu1 %v2982_v36 }
 0x25f   :  { %584 = vmatprep.subr.bf16.mxu0 %v2979_v35  ;;  %631 = vmatprep.subr.bf16.mxu1 %v2985_v37 }
 0x262   :  { %585 = vmatpush1.bf16.msra.mxu0 %v2988_v38  ;;  %632 = vmatpush1.bf16.msra.mxu1 %v2992_v39 }
 0x263   :  { %693 = vmatprep.subr.bf16.mxu0 %v2916_v2  ;;  %766 = vmatprep.subr.bf16.mxu1 %v2949_v24 }
 0x315   :  { %v463_v61 = vpop.f32.mrf.mxu0  ;;  %v531_v62 = vpop.f32.mrf.mxu1 }
 0x316   :  { %v464_v63 = vadd.f32 %v463_v61, %v376_v50  ;;  %v538_v0 = vadd.f32 %v2211_v59, %v531_v62 }
 0x317   :  { %v465_v10 = vpop.f32.mrf.mxu0  ;;  %v533_v11 = vpop.f32.mrf.mxu1 }
 0x318   :  { %v470_v12 = vadd.f32 %v464_v63, %v3036_v60  ;;  %v2214_v13 = vmul.f32 -1.442695, %v538_v0  ;;  %v466_v21 = vadd.f32 %v465_v10, %v378_v51  ;;  %v539_v44 = vadd.f32 %v2212_v41, %v533_v11 }
 0x319   :  { %v467_v14 = vpop.f32.mrf.mxu0  ;;  %v535_v15 = vpop.f32.mrf.mxu1 }
 0x31a   :  { %v2209_v16 = vmul.f32 -1.442695, %v470_v12  ;;  %2407 = vpow2.f32 %v2214_v13  ;;  %v471_v23 = vadd.f32 %v466_v21, %v3039_v20  ;;  %v2215_v53 = vmul.f32 -1.442695, %v539_v44 }
 0x31b   :  { %v468_v17 = vpop.f32.mrf.mxu0  ;;  %v536_v18 = vpop.f32.mrf.mxu1 }
 0x31c   :  { %2409 = vpow2.f32 %v2209_v16  ;;  %v2210_v52 = vmul.f32 -1.442695, %v471_v23 }
 0x31d   :  { %2411 = vtanh.f32 %v471_v23 }
 0x327   :  { %v2408_v22 = vpop.eup %2407 }
 0x328   :  { %v543_v43 = vadd.f32 1.0, %v2408_v22 }
 0x329   :  { %v2410_v40 = vpop.eup %2409 }
 0x32a   :  { %v475_v42 = vadd.f32 1.0, %v2410_v40  ;;  %v2412_v46 = vpop.eup %2411 }
 0x32c   :  { %2413 = vrcp.f32 %v475_v42 }
 0x32d   :  { %2415 = vrcp.f32 %v543_v43 }
 0x32e   :  { %2417 = vtanh.f32 %v539_v44 }
 0x32f   :  { %2419 = vpow2.f32 %v2210_v52 }
 0x330   :  { %2421 = vpow2.f32 %v2215_v53 }
 0x339   :  { %v2414_v47 = vpop.eup %2413 }
 0x33a   :  { %v486_v48 = vmul.f32 %v2414_v47, %v2412_v46  ;;  %v2416_v49 = vpop.eup %2415  ;;  %v485_v57 = vmul.f32 0.0, %v2414_v47 }
 0x33b   :  { %v2418_v50 = vpop.eup %2417  ;;  %v553_v62 = vmul.f32 %v2416_v49, %v3009_v45 }
 0x33c   :  { %488 = vrot.lane.b32.xlu1 %v486_v48, %s2792_s26  ;;  %v554_v51 = vmul.f32 %v2418_v50, %v2416_v49  ;;  %v2420_v54 = vpop.eup %2419  ;;  %v2220_v48 = vld [vmem:[%s3477_s0 + $0x20] sm:$0xff] }
 0x33d   :  { %v482_v55 = vadd.f32 1.0, %v2420_v54  ;;  %v2422_v56 = vpop.eup %2421 }
 0x33e   :  { %v550_v61 = vadd.f32 1.0, %v2422_v56 }
 0x33f   :  { %2423 = vrcp.f32 %v482_v55 }
 0x340   :  { %556 = vrot.lane.b32.xlu1 %v554_v51, %s2792_s26 }
 0x34c   :  { %v2424_v10 = vpop.eup %2423 }
 0x3ae   :  { %v489_v58 = vpop.permute.xlu1 %488 }
 0x3af   :  { %v3047_v59 = vadd.f32 %v489_v58, %v485_v57 }
 0x3b1   :  { %2425 = vtanh.f32 %v3047_v59 }
 0x3b2   :  { %v557_v63 = vpop.permute.xlu1 %556  ;;  %2427 = vrcp.f32 %v550_v61  ;;  %v2221_v61 = vld [vmem:[%s3477_s0 + $0x28] sm:$0xff] }
 0x3b3   :  { %v3051_v0 = vadd.f32 %v557_v63, %v553_v62 }
 0x3b5   :  { %2429 = vtanh.f32 %v3051_v0 }
 0x3be   :  { %v2426_v11 = vpop.eup %2425 }
 0x3bf   :  { %v493_v12 = vmul.f32 %v2426_v11, %v2424_v10  ;;  %v2428_v13 = vpop.eup %2427 }
 0x3c1   :  { %v563_v14 = vpack.c.bf16 %v493_v12, %v493_v12 }
 0x3c2   :  { %v2430_v15 = vpop.eup %2429 }
 0x3c3   :  { %565 = vrot.lane.b32.xlu0 %v563_v14, %s2792_s26  ;;  %v561_v16 = vmul.f32 %v2430_v15, %v2428_v13 }
 0x3c5   :  { %v562_v17 = vpack.c.bf16 %v561_v16, %v561_v16 }
 0x3c7   :  { %612 = vrot.lane.b32.xlu1 %v562_v17, %s2792_s26 }
 0x435   :  { %v566_v18 = vpop.permute.xlu0 %565 }
 0x436   :  { %2216 = vmatmul.mubr.msk.bf16.vlgmr.msra.gmra.mxu0 %vm216_vm0, %v566_v18 }
 0x437   :  { %694 = vmatpush1.bf16.msra.mxu0 %v2918_v3  ;;  %717 = vmatprep.mubr.bf16.mxu0 %v2791_v1 }
 0x438   :  { %695 = vmatprep.subr.bf16.mxu0 %v2921_v4 }
 0x439   :  { %v613_v45 = vpop.permute.xlu1 %612 }
 0x43a   :  { %2217 = vmatmul.mubr.msk.bf16.vlgmr.msra.gmra.mxu1 %vm216_vm0, %v613_v45 }
 0x43b   :  { %696 = vmatpush1.bf16.msra.mxu0 %v2924_v5  ;;  %767 = vmatpush1.bf16.msra.mxu1 %v2951_v25 }
 0x43c   :  { %697 = vmatprep.subr.bf16.mxu0 %v2927_v6  ;;  %768 = vmatprep.subr.bf16.mxu1 %v2953_v26 }
 0x43d   :  { %790 = vmatprep.mubr.bf16.mxu1 %v2791_v1 }
 0x43f   :  { %698 = vmatpush1.bf16.msra.mxu0 %v2929_v7  ;;  %769 = vmatpush1.bf16.msra.mxu1 %v2959_v28 }
 0x440   :  { %699 = vmatprep.subr.bf16.mxu0 %v2931_v8  ;;  %770 = vmatprep.subr.bf16.mxu1 %v2966_v31 }
 0x443   :  { %700 = vmatpush1.bf16.msra.mxu0 %v2936_v9  ;;  %771 = vmatpush1.bf16.msra.mxu1 %v2976_v34 }
 0x444   :  { %813 = vmatprep.subr.bf16.mxu0 %v2956_v27  ;;  %772 = vmatprep.subr.bf16.mxu1 %v2979_v35 }
 0x446   :  { %2222 = vmatmul.mubr.msk.bf16.vlgmr.msra.gmra.mxu0 %vm216_vm0, %v613_v45 }
 0x447   :  { %814 = vmatpush1.bf16.msra.mxu0 %v2961_v29  ;;  %773 = vmatpush1.bf16.msra.mxu1 %v2988_v38 }
 0x448   :  { %815 = vmatprep.subr.bf16.mxu0 %v2963_v30  ;;  %881 = vmatprep.subr.bf16.mxu1 %v2916_v2 }
 0x449   :  { %837 = vmatprep.mubr.bf16.mxu0 %v2791_v1 }
 0x44b   :  { %816 = vmatpush1.bf16.msra.mxu0 %v2970_v32 }
 0x44c   :  { %817 = vmatprep.subr.bf16.mxu0 %v2973_v33 }
 0x44f   :  { %818 = vmatpush1.bf16.msra.mxu0 %v2982_v36 }
 0x450   :  { %819 = vmatprep.subr.bf16.mxu0 %v2985_v37 }
 0x453   :  { %820 = vmatpush1.bf16.msra.mxu0 %v2992_v39 }
 0x454   :  { %954 = vmatprep.subr.bf16.mxu0 %v2949_v24 }
 0x4f6   :  { %v604_v19 = vpop.f32.mrf.mxu0 }
 0x4f8   :  { %v606_v21 = vpop.f32.mrf.mxu0 }
 0x4fa   :  { %v608_v22 = vpop.f32.mrf.mxu0  ;;  %v651_v23 = vpop.f32.mrf.mxu1 }
 0x4fb   :  { %v652_v40 = vadd.f32 %v651_v23, %v604_v19 }
 0x4fc   :  { %v609_v41 = vpop.f32.mrf.mxu0  ;;  %v653_v42 = vpop.f32.mrf.mxu1 }
 0x4fd   :  { %v658_v43 = vadd.f32 %v652_v40, %v3036_v60  ;;  %v654_v51 = vadd.f32 %v653_v42, %v606_v21 }
 0x4fe   :  { %v655_v44 = vpop.f32.mrf.mxu1 }
 0x4ff   :  { %v2218_v46 = vmul.f32 -1.442695, %v658_v43  ;;  %v659_v55 = vadd.f32 %v654_v51, %v3039_v20 }
 0x500   :  { %v656_v47 = vpop.f32.mrf.mxu1 }
 0x501   :  { %2431 = vpow2.f32 %v2218_v46  ;;  %v2219_v17 = vmul.f32 -1.442695, %v659_v55 }
 0x506   :  { %v719_v49 = vpop.f32.mrf.mxu0 }
 0x507   :  { %v726_v50 = vadd.f32 %v2220_v48, %v719_v49 }
 0x508   :  { %v721_v52 = vpop.f32.mrf.mxu0 }
 0x509   :  { %v2223_v53 = vmul.f32 -1.442695, %v726_v50  ;;  %v727_v62 = vadd.f32 %v2221_v61, %v721_v52 }
 0x50a   :  { %v723_v54 = vpop.f32.mrf.mxu0 }
 0x50b   :  { %2433 = vpow2.f32 %v2223_v53  ;;  %v2224_v18 = vmul.f32 -1.442695, %v727_v62 }
 0x50c   :  { %v724_v56 = vpop.f32.mrf.mxu0  ;;  %2435 = vtanh.f32 %v659_v55 }
 0x50e   :  { %v2432_v57 = vpop.eup %2431 }
 0x50f   :  { %v663_v58 = vadd.f32 1.0, %v2432_v57 }
 0x511   :  { %2437 = vrcp.f32 %v663_v58 }
 0x512   :  { %2439 = vtanh.f32 %v727_v62 }
 0x518   :  { %v2434_v63 = vpop.eup %2433 }
 0x519   :  { %v731_v10 = vadd.f32 1.0, %v2434_v63  ;;  %v2436_v11 = vpop.eup %2435 }
 0x51b   :  { %2441 = vrcp.f32 %v731_v10 }
 0x51c   :  { %2443 = vpow2.f32 %v2219_v17 }
 0x51d   :  { %2445 = vpow2.f32 %v2224_v18 }
 0x51e   :  { %v2438_v12 = vpop.eup %2437 }
 0x51f   :  { %v674_v13 = vmul.f32 %v2438_v12, %v2436_v11  ;;  %v2440_v14 = vpop.eup %2439  ;;  %v673_v21 = vmul.f32 %v2438_v12, %v3047_v59  ;;  %v2229_v11 = vld [vmem:[%s3477_s0 + $0x30] sm:$0xff] }
 0x521   :  { %676 = vrot.lane.b32.xlu0 %v674_v13, %s2792_s26 }
 0x528   :  { %v2442_v15 = vpop.eup %2441 }
 0x529   :  { %v742_v16 = vmul.f32 %v2442_v15, %v2440_v14  ;;  %v2444_v45 = vpop.eup %2443  ;;  %v741_v42 = vmul.f32 %v2442_v15, %v3051_v0 }
 0x52a   :  { %v670_v19 = vadd.f32 1.0, %v2444_v45  ;;  %v2446_v40 = vpop.eup %2445 }
 0x52b   :  { %744 = vrot.lane.b32.xlu1 %v742_v16, %s2792_s26  ;;  %v738_v41 = vadd.f32 1.0, %v2446_v40 }
 0x52c   :  { %2447 = vrcp.f32 %v670_v19 }
 0x539   :  { %v2448_v46 = vpop.eup %2447 }
 0x593   :  { %v677_v22 = vpop.permute.xlu0 %676 }
 0x594   :  { %v3097_v23 = vadd.f32 %v677_v22, %v673_v21  ;;  %v2230_v22 = vld [vmem:[%s3477_s0 + $0x38] sm:$0xff] }
 0x596   :  { %2449 = vtanh.f32 %v3097_v23 }
 0x597   :  { %2451 = vrcp.f32 %v738_v41 }
 0x59d   :  { %v745_v43 = vpop.permute.xlu1 %744 }
 0x59e   :  { %v3101_v44 = vadd.f32 %v745_v43, %v741_v42 }
 0x5a0   :  { %2453 = vtanh.f32 %v3101_v44 }
 0x5a3   :  { %v2450_v47 = vpop.eup %2449 }
 0x5a4   :  { %v681_v48 = vmul.f32 %v2450_v47, %v2448_v46  ;;  %v2452_v49 = vpop.eup %2451 }
 0x5a6   :  { %v751_v59 = vpack.c.bf16 %v681_v48, %v681_v48 }
 0x5a8   :  { %753 = vrot.lane.b32.xlu0 %v751_v59, %s2792_s26 }
 0x5ad   :  { %v2454_v50 = vpop.eup %2453 }
 0x5ae   :  { %v749_v51 = vmul.f32 %v2454_v50, %v2452_v49 }
 0x5b0   :  { %v750_v52 = vpack.c.bf16 %v749_v51, %v749_v51 }
 0x5b2   :  { %800 = vrot.lane.b32.xlu1 %v750_v52, %s2792_s26 }
 0x61a   :  { %v754_v53 = vpop.permute.xlu0 %753 }
 0x61b   :  { %2225 = vmatmul.mubr.msk.bf16.vlgmr.msra.gmra.mxu1 %vm216_vm0, %v754_v53 }
 0x61c   :  { %882 = vmatpush1.bf16.msra.mxu1 %v2918_v3  ;;  %905 = vmatprep.mubr.bf16.mxu1 %v2791_v1 }
 0x61d   :  { %883 = vmatprep.subr.bf16.mxu1 %v2921_v4 }
 0x620   :  { %884 = vmatpush1.bf16.msra.mxu1 %v2924_v5 }
 0x621   :  { %885 = vmatprep.subr.bf16.mxu1 %v2927_v6 }
 0x624   :  { %886 = vmatpush1.bf16.msra.mxu1 %v2929_v7  ;;  %v801_v0 = vpop.permute.xlu1 %800 }
 0x625   :  { %2226 = vmatmul.mubr.msk.bf16.vlgmr.msra.gmra.mxu0 %vm216_vm0, %v801_v0  ;;  %887 = vmatprep.subr.bf16.mxu1 %v2931_v8 }
 0x626   :  { %955 = vmatpush1.bf16.msra.mxu0 %v2951_v25  ;;  %978 = vmatprep.mubr.bf16.mxu0 %v2791_v1 }
 0x627   :  { %956 = vmatprep.subr.bf16.mxu0 %v2953_v26 }
 0x628   :  { %888 = vmatpush1.bf16.msra.mxu1 %v2936_v9 }
 0x629   :  { %1001 = vmatprep.subr.bf16.mxu1 %v2956_v27 }
 0x62a   :  { %957 = vmatpush1.bf16.msra.mxu0 %v2959_v28 }
 0x62b   :  { %2231 = vmatmul.mubr.msk.bf16.vlgmr.msra.gmra.mxu1 %vm216_vm0, %v801_v0  ;;  %958 = vmatprep.subr.bf16.mxu0 %v2966_v31 }
 0x62c   :  { %1002 = vmatpush1.bf16.msra.mxu1 %v2961_v29  ;;  %1025 = vmatprep.mubr.bf16.mxu1 %v2791_v1 }
 0x62d   :  { %1003 = vmatprep.subr.bf16.mxu1 %v2963_v30 }
 0x62e   :  { %959 = vmatpush1.bf16.msra.mxu0 %v2976_v34 }
 0x62f   :  { %960 = vmatprep.subr.bf16.mxu0 %v2979_v35 }
 0x630   :  { %1004 = vmatpush1.bf16.msra.mxu1 %v2970_v32 }
 0x631   :  { %1005 = vmatprep.subr.bf16.mxu1 %v2973_v33 }
 0x632   :  { %961 = vmatpush1.bf16.msra.mxu0 %v2988_v38 }
 0x633   :  { %1069 = vmatprep.subr.bf16.mxu0 %v2916_v2 }
 0x634   :  { %1006 = vmatpush1.bf16.msra.mxu1 %v2982_v36 }
 0x635   :  { %1007 = vmatprep.subr.bf16.mxu1 %v2985_v37 }
 0x638   :  { %1008 = vmatpush1.bf16.msra.mxu1 %v2992_v39 }
 0x639   :  { %1142 = vmatprep.subr.bf16.mxu1 %v2949_v24 }
 0x6db   :  { %v792_v54 = vpop.f32.mrf.mxu1 }
 0x6dd   :  { %v794_v55 = vpop.f32.mrf.mxu1 }
 0x6df   :  { %v796_v56 = vpop.f32.mrf.mxu1 }
 0x6e1   :  { %v797_v57 = vpop.f32.mrf.mxu1 }
 0x6e5   :  { %v839_v58 = vpop.f32.mrf.mxu0 }
 0x6e6   :  { %v840_v61 = vadd.f32 %v839_v58, %v792_v54 }
 0x6e7   :  { %v841_v62 = vpop.f32.mrf.mxu0 }
 0x6e8   :  { %v846_v63 = vadd.f32 %v840_v61, %v3036_v60  ;;  %v842_v19 = vadd.f32 %v841_v62, %v794_v55 }
 0x6e9   :  { %v843_v10 = vpop.f32.mrf.mxu0 }
 0x6ea   :  { %v2227_v12 = vmul.f32 -1.442695, %v846_v63  ;;  %v847_v21 = vadd.f32 %v842_v19, %v3039_v20 }
 0x6eb   :  { %v844_v13 = vpop.f32.mrf.mxu0  ;;  %v907_v14 = vpop.f32.mrf.mxu1 }
 0x6ec   :  { %2455 = vpow2.f32 %v2227_v12  ;;  %v914_v15 = vadd.f32 %v2229_v11, %v907_v14  ;;  %v2228_v52 = vmul.f32 -1.442695, %v847_v21 }
 0x6ed   :  { %v909_v16 = vpop.f32.mrf.mxu1 }
 0x6ee   :  { %v2232_v17 = vmul.f32 -1.442695, %v914_v15  ;;  %v915_v42 = vadd.f32 %v2230_v22, %v909_v16 }
 0x6ef   :  { %v911_v18 = vpop.f32.mrf.mxu1 }
 0x6f0   :  { %2457 = vpow2.f32 %v2232_v17  ;;  %v2233_v53 = vmul.f32 -1.442695, %v915_v42 }
 0x6f1   :  { %v912_v45 = vpop.f32.mrf.mxu1  ;;  %2459 = vtanh.f32 %v847_v21 }
 0x6f9   :  { %v2456_v40 = vpop.eup %2455 }
 0x6fa   :  { %v851_v41 = vadd.f32 1.0, %v2456_v40 }
 0x6fc   :  { %2461 = vrcp.f32 %v851_v41 }
 0x6fd   :  { %v2458_v43 = vpop.eup %2457  ;;  %2463 = vtanh.f32 %v915_v42 }
 0x6fe   :  { %v919_v46 = vadd.f32 1.0, %v2458_v43  ;;  %v2460_v47 = vpop.eup %2459 }
 0x700   :  { %2465 = vrcp.f32 %v919_v46  ;;  %v2238_v46 = vld [vmem:[%s3477_s0 + $0x40] sm:$0xff] }
 0x701   :  { %2467 = vpow2.f32 %v2228_v52 }
 0x702   :  { %2469 = vpow2.f32 %v2233_v53 }
 0x709   :  { %v2462_v48 = vpop.eup %2461 }
 0x70a   :  { %v862_v59 = vmul.f32 %v2462_v48, %v2460_v47  ;;  %v2464_v49 = vpop.eup %2463  ;;  %v861_v56 = vmul.f32 %v2462_v48, %v3097_v23 }
 0x70c   :  { %864 = vrot.lane.b32.xlu0 %v862_v59, %s2792_s26 }
 0x70d   :  { %v2466_v50 = vpop.eup %2465 }
 0x70e   :  { %v930_v51 = vmul.f32 %v2466_v50, %v2464_v49  ;;  %v2468_v0 = vpop.eup %2467  ;;  %v929_v62 = vmul.f32 %v2466_v50, %v3101_v44 }
 0x70f   :  { %v858_v54 = vadd.f32 1.0, %v2468_v0  ;;  %v2470_v55 = vpop.eup %2469 }
 0x710   :  { %932 = vrot.lane.b32.xlu1 %v930_v51, %s2792_s26  ;;  %v926_v61 = vadd.f32 1.0, %v2470_v55  ;;  %v2239_v55 = vld [vmem:[%s3477_s0 + $0x48] sm:$0xff] }
 0x711   :  { %2471 = vrcp.f32 %v858_v54 }
 0x71e   :  { %v2472_v11 = vpop.eup %2471 }
 0x77e   :  { %v865_v57 = vpop.permute.xlu0 %864 }
 0x77f   :  { %v3147_v58 = vadd.f32 %v865_v57, %v861_v56 }
 0x781   :  { %2473 = vtanh.f32 %v3147_v58 }
 0x782   :  { %v933_v63 = vpop.permute.xlu1 %932  ;;  %2475 = vrcp.f32 %v926_v61 }
 0x783   :  { %v3151_v10 = vadd.f32 %v933_v63, %v929_v62 }
 0x785   :  { %2477 = vtanh.f32 %v3151_v10 }
 0x78e   :  { %v2474_v12 = vpop.eup %2473 }
 0x78f   :  { %v869_v13 = vmul.f32 %v2474_v12, %v2472_v11  ;;  %v2476_v14 = vpop.eup %2475 }
 0x791   :  { %v939_v23 = vpack.c.bf16 %v869_v13, %v869_v13 }
 0x792   :  { %v2478_v15 = vpop.eup %2477 }
 0x793   :  { %941 = vrot.lane.b32.xlu0 %v939_v23, %s2792_s26  ;;  %v937_v16 = vmul.f32 %v2478_v15, %v2476_v14 }
 0x795   :  { %v938_v17 = vpack.c.bf16 %v937_v16, %v937_v16 }
 0x797   :  { %988 = vrot.lane.b32.xlu1 %v938_v17, %s2792_s26 }
 0x805   :  { %v942_v18 = vpop.permute.xlu0 %941 }
 0x806   :  { %2234 = vmatmul.mubr.msk.bf16.vlgmr.msra.gmra.mxu0 %vm216_vm0, %v942_v18 }
 0x807   :  { %1070 = vmatpush1.bf16.msra.mxu0 %v2918_v3  ;;  %1093 = vmatprep.mubr.bf16.mxu0 %v2791_v1 }
 0x808   :  { %1071 = vmatprep.subr.bf16.mxu0 %v2921_v4 }
 0x809   :  { %v989_v44 = vpop.permute.xlu1 %988 }
 0x80a   :  { %2235 = vmatmul.mubr.msk.bf16.vlgmr.msra.gmra.mxu1 %vm216_vm0, %v989_v44 }
 0x80b   :  { %1072 = vmatpush1.bf16.msra.mxu0 %v2924_v5  ;;  %1143 = vmatpush1.bf16.msra.mxu1 %v2951_v25 }
 0x80c   :  { %1073 = vmatprep.subr.bf16.mxu0 %v2927_v6  ;;  %1144 = vmatprep.subr.bf16.mxu1 %v2953_v26 }
 0x80d   :  { %1166 = vmatprep.mubr.bf16.mxu1 %v2791_v1 }
 0x80f   :  { %1074 = vmatpush1.bf16.msra.mxu0 %v2929_v7  ;;  %1145 = vmatpush1.bf16.msra.mxu1 %v2959_v28 }
 0x810   :  { %1075 = vmatprep.subr.bf16.mxu0 %v2931_v8  ;;  %1146 = vmatprep.subr.bf16.mxu1 %v2966_v31 }
 0x813   :  { %1076 = vmatpush1.bf16.msra.mxu0 %v2936_v9  ;;  %1147 = vmatpush1.bf16.msra.mxu1 %v2976_v34 }
 0x814   :  { %1189 = vmatprep.subr.bf16.mxu0 %v2956_v27  ;;  %1148 = vmatprep.subr.bf16.mxu1 %v2979_v35 }
 0x816   :  { %2240 = vmatmul.mubr.msk.bf16.vlgmr.msra.gmra.mxu0 %vm216_vm0, %v989_v44 }
 0x817   :  { %1190 = vmatpush1.bf16.msra.mxu0 %v2961_v29  ;;  %1149 = vmatpush1.bf16.msra.mxu1 %v2988_v38 }
 0x818   :  { %1191 = vmatprep.subr.bf16.mxu0 %v2963_v30  ;;  %1257 = vmatprep.subr.bf16.mxu1 %v2916_v2 }
 0x819   :  { %1213 = vmatprep.mubr.bf16.mxu0 %v2791_v1 }
 0x81b   :  { %1192 = vmatpush1.bf16.msra.mxu0 %v2970_v32 }
 0x81c   :  { %1193 = vmatprep.subr.bf16.mxu0 %v2973_v33 }
 0x81f   :  { %1194 = vmatpush1.bf16.msra.mxu0 %v2982_v36 }
 0x820   :  { %1195 = vmatprep.subr.bf16.mxu0 %v2985_v37 }
 0x823   :  { %1196 = vmatpush1.bf16.msra.mxu0 %v2992_v39 }
 0x824   :  { %1330 = vmatprep.subr.bf16.mxu0 %v2949_v24 }
 0x8c6   :  { %v980_v3 = vpop.f32.mrf.mxu0 }
 0x8c8   :  { %v982_v4 = vpop.f32.mrf.mxu0 }
 0x8ca   :  { %v984_v45 = vpop.f32.mrf.mxu0  ;;  %v1027_v19 = vpop.f32.mrf.mxu1 }
 0x8cb   :  { %v1028_v21 = vadd.f32 %v1027_v19, %v980_v3 }
 0x8cc   :  { %v985_v2 = vpop.f32.mrf.mxu0  ;;  %v1029_v22 = vpop.f32.mrf.mxu1 }
 0x8cd   :  { %v1034_v40 = vadd.f32 %v1028_v21, %v3036_v60  ;;  %v1030_v59 = vadd.f32 %v1029_v22, %v982_v4 }
 0x8ce   :  { %v1031_v41 = vpop.f32.mrf.mxu1 }
 0x8cf   :  { %v2236_v42 = vmul.f32 -1.442695, %v1034_v40  ;;  %v1035_v52 = vadd.f32 %v1030_v59, %v3039_v20  ;;  %v3211_v59 = vld [vmem:[#allocation5 + $0x24] ss:$8 sps:$4 sm:$0xff]  }
 0x8d0   :  { %v1032_v43 = vpop.f32.mrf.mxu1 }
 0x8d1   :  { %2479 = vpow2.f32 %v2236_v42  ;;  %v2237_v23 = vmul.f32 -1.442695, %v1035_v52 }
 0x8d6   :  { %v1095_v47 = vpop.f32.mrf.mxu0 }
 0x8d7   :  { %v1102_v48 = vadd.f32 %v2238_v46, %v1095_v47 }
 0x8d8   :  { %v1097_v49 = vpop.f32.mrf.mxu0 }
 0x8d9   :  { %v2241_v50 = vmul.f32 -1.442695, %v1102_v48  ;;  %v1103_v56 = vadd.f32 %v2239_v55, %v1097_v49 }
 0x8da   :  { %v1099_v51 = vpop.f32.mrf.mxu0 }
 0x8db   :  { %2481 = vpow2.f32 %v2241_v50  ;;  %v2242_v15 = vmul.f32 -1.442695, %v1103_v56  ;;  %v2248_v50 = vld [vmem:[%s3477_s0 + $0x58] sm:$0xff] }
 0x8dc   :  { %v1100_v53 = vpop.f32.mrf.mxu0  ;;  %2483 = vtanh.f32 %v1035_v52 }
 0x8de   :  { %v2480_v0 = vpop.eup %2479 }
 0x8df   :  { %v1039_v54 = vadd.f32 1.0, %v2480_v0 }
 0x8e1   :  { %2485 = vrcp.f32 %v1039_v54 }
 0x8e2   :  { %2487 = vtanh.f32 %v1103_v56 }
 0x8e8   :  { %v2482_v57 = vpop.eup %2481 }
 0x8e9   :  { %v1107_v61 = vadd.f32 1.0, %v2482_v57  ;;  %v2484_v62 = vpop.eup %2483 }
 0x8eb   :  { %2489 = vrcp.f32 %v1107_v61 }
 0x8ec   :  { %2491 = vpow2.f32 %v2237_v23 }
 0x8ed   :  { %2493 = vpow2.f32 %v2242_v15 }
 0x8ee   :  { %v2486_v63 = vpop.eup %2485 }
 0x8ef   :  { %v1050_v11 = vmul.f32 %v2486_v63, %v2484_v62  ;;  %v2488_v12 = vpop.eup %2487  ;;  %v1049_v18 = vmul.f32 %v2486_v63, %v3147_v58 }
 0x8f1   :  { %1052 = vrot.lane.b32.xlu0 %v1050_v11, %s2792_s26 }
 0x8f8   :  { %v2490_v13 = vpop.eup %2489 }
 0x8f9   :  { %v1118_v14 = vmul.f32 %v2490_v13, %v2488_v12  ;;  %v2492_v16 = vpop.eup %2491  ;;  %v1117_v19 = vmul.f32 %v2490_v13, %v3151_v10  ;;  %v3207_v10 = vld [vmem:[#allocation5 + $0x30] ss:$8 sps:$4 sm:$0xff]  }
 0x8fa   :  { %v1046_v17 = vadd.f32 1.0, %v2492_v16  ;;  %v2494_v4 = vpop.eup %2493 }
 0x8fb   :  { %1120 = vrot.lane.b32.xlu1 %v1118_v14, %s2792_s26  ;;  %v1114_v45 = vadd.f32 1.0, %v2494_v4 }
 0x8fc   :  { %2495 = vrcp.f32 %v1046_v17 }
 0x909   :  { %v2496_v22 = vpop.eup %2495 }
 0x963   :  { %v1053_v44 = vpop.permute.xlu0 %1052 }
 0x964   :  { %v3197_v3 = vadd.f32 %v1053_v44, %v1049_v18 }
 0x966   :  { %2497 = vtanh.f32 %v3197_v3 }
 0x967   :  { %2499 = vrcp.f32 %v1114_v45 }
 0x96d   :  { %v1121_v21 = vpop.permute.xlu1 %1120 }
 0x96e   :  { %v3201_v2 = vadd.f32 %v1121_v21, %v1117_v19 }
 0x970   :  { %2501 = vtanh.f32 %v3201_v2 }
 0x973   :  { %v2498_v40 = vpop.eup %2497 }
 0x974   :  { %v1057_v41 = vmul.f32 %v2498_v40, %v2496_v22  ;;  %v2500_v42 = vpop.eup %2499 }
 0x976   :  { %v1127_v58 = vpack.c.bf16 %v1057_v41, %v1057_v41 }
 0x978   :  { %1129 = vrot.lane.b32.xlu0 %v1127_v58, %s2792_s26 }
 0x97d   :  { %v2502_v43 = vpop.eup %2501 }
 0x97e   :  { %v1125_v46 = vmul.f32 %v2502_v43, %v2500_v42 }
 0x980   :  { %v1126_v47 = vpack.c.bf16 %v1125_v46, %v1125_v46  ;;  %v3267_v46 = vld [vmem:[#allocation5 + $0x20] ss:$8 sps:$4 sm:$0xff]  }
 0x982   :  { %1176 = vrot.lane.b32.xlu1 %v1126_v47, %s2792_s26  ;;  %v3270_v47 = vld [vmem:[#allocation8 + $0x30] ss:$8 sps:$4 sm:$0xff]  }
 0x9ea   :  { %v1130_v48 = vpop.permute.xlu0 %1129 }
 0x9eb   :  { %2243 = vmatmul.mubr.msk.bf16.vlgmr.msra.gmra.mxu1 %vm216_vm0, %v1130_v48  ;;  %v3273_v48 = vld [vmem:[#allocation5 + $0x14] ss:$8 sps:$4 sm:$0xff]  }
 0x9ec   :  { %1258 = vmatpush1.bf16.msra.mxu1 %v3207_v10  ;;  %1281 = vmatprep.mubr.bf16.mxu1 %v2791_v1 }
 0x9ed   :  { %1259 = vmatprep.subr.bf16.mxu1 %v3211_v59 }
 0x9f0   :  { %1260 = vmatpush1.bf16.msra.mxu1 %v2924_v5  ;;  %v3235_v5 = vld [vmem:[#allocation5 + $0x34] ss:$8 sps:$4 sm:$0xff]  }
 0x9f1   :  { %1261 = vmatprep.subr.bf16.mxu1 %v2927_v6 }
 0x9f4   :  { %1262 = vmatpush1.bf16.msra.mxu1 %v2929_v7  ;;  %v1177_v49 = vpop.permute.xlu1 %1176 }
 0x9f5   :  { %2244 = vmatmul.mubr.msk.bf16.vlgmr.msra.gmra.mxu0 %vm216_vm0, %v1177_v49  ;;  %1263 = vmatprep.subr.bf16.mxu1 %v2931_v8 }
 0x9f6   :  { %1331 = vmatpush1.bf16.msra.mxu0 %v2951_v25  ;;  %1354 = vmatprep.mubr.bf16.mxu0 %v2791_v1 }
 0x9f7   :  { %1332 = vmatprep.subr.bf16.mxu0 %v2953_v26 }
 0x9f8   :  { %1264 = vmatpush1.bf16.msra.mxu1 %v2936_v9 }
 0x9f9   :  { %1377 = vmatprep.subr.bf16.mxu1 %v2956_v27 }
 0x9fa   :  { %1333 = vmatpush1.bf16.msra.mxu0 %v2959_v28 }
 0x9fb   :  { %2249 = vmatmul.mubr.msk.bf16.vlgmr.msra.gmra.mxu1 %vm216_vm0, %v1177_v49  ;;  %1334 = vmatprep.subr.bf16.mxu0 %v2966_v31  ;;  %v3276_v49 = vld [vmem:[#allocation8 + $0x24] ss:$8 sps:$4 sm:$0xff]  }
 0x9fc   :  { %1378 = vmatpush1.bf16.msra.mxu1 %v2961_v29  ;;  %1401 = vmatprep.mubr.bf16.mxu1 %v2791_v1 }
 0x9fd   :  { %1379 = vmatprep.subr.bf16.mxu1 %v2963_v30  ;;  %v2247_v30 = vld [vmem:[%s3477_s0 + $0x50] sm:$0xff] }
 0x9fe   :  { %1335 = vmatpush1.bf16.msra.mxu0 %v2976_v34 }
 0x9ff   :  { %1336 = vmatprep.subr.bf16.mxu0 %v2979_v35 }
 0xa00   :  { %1380 = vmatpush1.bf16.msra.mxu1 %v2970_v32 }
 0xa01   :  { %1381 = vmatprep.subr.bf16.mxu1 %v2973_v33 }
 0xa02   :  { %1337 = vmatpush1.bf16.msra.mxu0 %v2988_v38 }
 0xa03   :  { %1445 = vmatprep.subr.bf16.mxu0 %v3235_v5 }
 0xa04   :  { %1382 = vmatpush1.bf16.msra.mxu1 %v2982_v36 }
 0xa05   :  { %1383 = vmatprep.subr.bf16.mxu1 %v2985_v37 }
 0xa08   :  { %1384 = vmatpush1.bf16.msra.mxu1 %v2992_v39 }
 0xa09   :  { %1518 = vmatprep.subr.bf16.mxu1 %v2949_v24 }
 0xaab   :  { %v1168_v6 = vpop.f32.mrf.mxu1 }
 0xaad   :  { %v1170_v7 = vpop.f32.mrf.mxu1 }
 0xaaf   :  { %v1172_v8 = vpop.f32.mrf.mxu1 }
 0xab0   :  { %v3286_v8 = vld [vmem:[#allocation5 + $0x4] ss:$8 sps:$4 sm:$0xff]  }
 0xab1   :  { %v1173_v9 = vpop.f32.mrf.mxu1 }
 0xab2   :  { %v3289_v9 = vld [vmem:[#allocation8 + $0x14] ss:$8 sps:$4 sm:$0xff]  }
 0xab5   :  { %v1215_v25 = vpop.f32.mrf.mxu0 }
 0xab6   :  { %v1216_v26 = vadd.f32 %v1215_v25, %v1168_v6  ;;  %v3280_v6 = vld [vmem:[#allocation5 + $0x10] ss:$8 sps:$4 sm:$0xff]   ;;  %v3292_v25 = vld [vmem:[#allocation5] ss:$8 sps:$4 sm:$0xff]  }
 0xab7   :  { %v1217_v27 = vpop.f32.mrf.mxu0 }
 0xab8   :  { %v1222_v28 = vadd.f32 %v1216_v26, %v3036_v60  ;;  %v1218_v38 = vadd.f32 %v1217_v27, %v1170_v7  ;;  %v3283_v7 = vld [vmem:[#allocation8 + $0x20] ss:$8 sps:$4 sm:$0xff]   ;;  %v3295_v26 = vld [vmem:[#allocation8 + $0x10] ss:$8 sps:$4 sm:$0xff]   ;;  %v3298_v27 = vld [vmem:[#allocation7 + $0x34] ss:$8 sps:$4 sm:$0xff]  }
 0xab9   :  { %v1219_v29 = vpop.f32.mrf.mxu0 }
 0xaba   :  { %v2245_v31 = vmul.f32 -1.442695, %v1222_v28  ;;  %v1223_v39 = vadd.f32 %v1218_v38, %v3039_v20  ;;  %v3301_v28 = vld [vmem:[#allocation8 + $0x4] ss:$8 sps:$4 sm:$0xff]   ;;  %v3305_v29 = vld [vmem:[#allocation7 + $0x30] ss:$8 sps:$4 sm:$0xff]  }
 0xabb   :  { %v1220_v32 = vpop.f32.mrf.mxu0  ;;  %v1283_v33 = vpop.f32.mrf.mxu1 }
 0xabc   :  { %2503 = vpow2.f32 %v2245_v31  ;;  %v1290_v34 = vadd.f32 %v2247_v30, %v1283_v33  ;;  %v2246_v11 = vmul.f32 -1.442695, %v1223_v39  ;;  %v3308_v30 = vld [vmem:[#allocation8] ss:$8 sps:$4 sm:$0xff]   ;;  %v3311_v31 = vld [vmem:[#allocation7 + $0x24] ss:$8 sps:$4 sm:$0xff]  }
 0xabd   :  { %v1285_v24 = vpop.f32.mrf.mxu1  ;;  %v3316_v32 = vld [vmem:[#allocation7 + $0x20] ss:$8 sps:$4 sm:$0xff]   ;;  %v3319_v33 = vld [vmem:[#allocation7 + $0x14] ss:$8 sps:$4 sm:$0xff]  }
 0xabe   :  { %v2250_v35 = vmul.f32 -1.442695, %v1290_v34  ;;  %v1291_v53 = vadd.f32 %v2248_v50, %v1285_v24  ;;  %v3322_v34 = vld [vmem:[#allocation7 + $0x10] ss:$8 sps:$4 sm:$0xff]   ;;  %v3325_v24 = vld [vmem:[#allocation7 + $0x4] ss:$8 sps:$4 sm:$0xff]  }
 0xabf   :  { %v1287_v36 = vpop.f32.mrf.mxu1 }
 0xac0   :  { %2505 = vpow2.f32 %v2250_v35  ;;  %v2251_v12 = vmul.f32 -1.442695, %v1291_v53  ;;  %v3328_v35 = vld [vmem:[#allocation7] ss:$8 sps:$4 sm:$0xff]  }
 0xac1   :  { %v1288_v37 = vpop.f32.mrf.mxu1  ;;  %2507 = vtanh.f32 %v1223_v39 }
 0xac9   :  { %v2504_v51 = vpop.eup %2503 }
 0xaca   :  { %v1227_v52 = vadd.f32 1.0, %v2504_v51 }
 0xacc   :  { %2509 = vrcp.f32 %v1227_v52 }
 0xacd   :  { %v2506_v0 = vpop.eup %2505  ;;  %2511 = vtanh.f32 %v1291_v53 }
 0xace   :  { %v1295_v54 = vadd.f32 1.0, %v2506_v0  ;;  %v2508_v55 = vpop.eup %2507 }
 0xad0   :  { %2513 = vrcp.f32 %v1295_v54 }
 0xad1   :  { %2515 = vpow2.f32 %v2246_v11 }
 0xad2   :  { %2517 = vpow2.f32 %v2251_v12 }
 0xad9   :  { %v2510_v56 = vpop.eup %2509 }
 0xada   :  { %v1238_v57 = vmul.f32 %v2510_v56, %v2508_v55  ;;  %v2512_v61 = vpop.eup %2511  ;;  %v1237_v15 = vmul.f32 %v2510_v56, %v3197_v3  ;;  %v2256_v56 = vld [vmem:[%s3477_s0 + $0x60] sm:$0xff] }
 0xadc   :  { %1240 = vrot.lane.b32.xlu0 %v1238_v57, %s2792_s26 }
 0xadd   :  { %v2514_v62 = vpop.eup %2513 }
 0xade   :  { %v1306_v63 = vmul.f32 %v2514_v62, %v2512_v61  ;;  %v2516_v13 = vpop.eup %2515  ;;  %v1305_v44 = vmul.f32 %v2514_v62, %v3201_v2 }
 0xadf   :  { %v1234_v14 = vadd.f32 1.0, %v2516_v13  ;;  %v2518_v23 = vpop.eup %2517 }
 0xae0   :  { %1308 = vrot.lane.b32.xlu1 %v1306_v63, %s2792_s26  ;;  %v1302_v18 = vadd.f32 1.0, %v2518_v23 }
 0xae1   :  { %2519 = vrcp.f32 %v1234_v14 }
 0xaee   :  { %v2520_v19 = vpop.eup %2519 }
 0xb4e   :  { %v1241_v16 = vpop.permute.xlu0 %1240 }
 0xb4f   :  { %v3253_v17 = vadd.f32 %v1241_v16, %v1237_v15  ;;  %v2257_v16 = vld [vmem:[%s3477_s0 + $0x68] sm:$0xff] }
 0xb51   :  { %2521 = vtanh.f32 %v3253_v17 }
 0xb52   :  { %v1309_v4 = vpop.permute.xlu1 %1308  ;;  %2523 = vrcp.f32 %v1302_v18 }
 0xb53   :  { %v3257_v45 = vadd.f32 %v1309_v4, %v1305_v44 }
 0xb55   :  { %2525 = vtanh.f32 %v3257_v45 }
 0xb5e   :  { %v2522_v21 = vpop.eup %2521 }
 0xb5f   :  { %v1245_v22 = vmul.f32 %v2522_v21, %v2520_v19  ;;  %v2524_v40 = vpop.eup %2523 }
 0xb61   :  { %v1315_v3 = vpack.c.bf16 %v1245_v22, %v1245_v22 }
 0xb62   :  { %v2526_v41 = vpop.eup %2525 }
 0xb63   :  { %1317 = vrot.lane.b32.xlu0 %v1315_v3, %s2792_s26  ;;  %v1313_v58 = vmul.f32 %v2526_v41, %v2524_v40 }
 0xb65   :  { %v1314_v42 = vpack.c.bf16 %v1313_v58, %v1313_v58 }
 0xb67   :  { %1364 = vrot.lane.b32.xlu1 %v1314_v42, %s2792_s26 }
 0xbd5   :  { %v1318_v43 = vpop.permute.xlu0 %1317 }
 0xbd6   :  { %2252 = vmatmul.mubr.msk.bf16.vlgmr.msra.gmra.mxu0 %vm216_vm0, %v1318_v43 }
 0xbd7   :  { %1446 = vmatpush1.bf16.msra.mxu0 %v3207_v10  ;;  %1469 = vmatprep.mubr.bf16.mxu0 %v2791_v1 }
 0xbd8   :  { %1447 = vmatprep.subr.bf16.mxu0 %v3211_v59 }
 0xbd9   :  { %v1365_v2 = vpop.permute.xlu1 %1364 }
 0xbda   :  { %2253 = vmatmul.mubr.msk.bf16.vlgmr.msra.gmra.mxu1 %vm216_vm0, %v1365_v2 }
 0xbdb   :  { %1448 = vmatpush1.bf16.msra.mxu0 %v3267_v46  ;;  %1519 = vmatpush1.bf16.msra.mxu1 %v3270_v47 }
 0xbdc   :  { %1449 = vmatprep.subr.bf16.mxu0 %v3273_v48  ;;  %1520 = vmatprep.subr.bf16.mxu1 %v3276_v49 }
 0xbdd   :  { %1542 = vmatprep.mubr.bf16.mxu1 %v2791_v1 }
 0xbdf   :  { %1450 = vmatpush1.bf16.msra.mxu0 %v3280_v6  ;;  %1521 = vmatpush1.bf16.msra.mxu1 %v3283_v7 }
 0xbe0   :  { %1451 = vmatprep.subr.bf16.mxu0 %v3286_v8  ;;  %1522 = vmatprep.subr.bf16.mxu1 %v3289_v9 }
 0xbe3   :  { %1452 = vmatpush1.bf16.msra.mxu0 %v3292_v25  ;;  %1523 = vmatpush1.bf16.msra.mxu1 %v3295_v26 }
 0xbe4   :  { %1565 = vmatprep.subr.bf16.mxu0 %v3298_v27  ;;  %1524 = vmatprep.subr.bf16.mxu1 %v3301_v28 }
 0xbe6   :  { %2258 = vmatmul.mubr.msk.bf16.vlgmr.msra.gmra.mxu0 %vm216_vm0, %v1365_v2 }
 0xbe7   :  { %1566 = vmatpush1.bf16.msra.mxu0 %v3305_v29  ;;  %1525 = vmatpush1.bf16.msra.mxu1 %v3308_v30 }
 0xbe8   :  { %1567 = vmatprep.subr.bf16.mxu0 %v3311_v31  ;;  %1633 = vmatprep.subr.bf16.mxu1 %v3235_v5  ;;  %v2610_v5 = vld [vmem:[#allocation8 + $0x34] ss:$8 sps:$4 sm:$0xff]  }
 0xbe9   :  { %1589 = vmatprep.mubr.bf16.mxu0 %v2791_v1 }
 0xbeb   :  { %1568 = vmatpush1.bf16.msra.mxu0 %v3316_v32 }
 0xbec   :  { %1569 = vmatprep.subr.bf16.mxu0 %v3319_v33 }
 0xbef   :  { %1570 = vmatpush1.bf16.msra.mxu0 %v3322_v34 }
 0xbf0   :  { %1571 = vmatprep.subr.bf16.mxu0 %v3325_v24 }
 0xbf3   :  { %1572 = vmatpush1.bf16.msra.mxu0 %v3328_v35 }
 0xbf4   :  { %1706 = vmatprep.subr.bf16.mxu0 %v2610_v5 }
 0xc96   :  { %v1356_v36 = vpop.f32.mrf.mxu0 }
 0xc98   :  { %v1358_v37 = vpop.f32.mrf.mxu0 }
 0xc9a   :  { %v1360_v38 = vpop.f32.mrf.mxu0  ;;  %v1403_v39 = vpop.f32.mrf.mxu1 }
 0xc9b   :  { %v1404_v50 = vadd.f32 %v1403_v39, %v1356_v36 }
 0xc9c   :  { %v1361_v51 = vpop.f32.mrf.mxu0  ;;  %v1405_v52 = vpop.f32.mrf.mxu1 }
 0xc9d   :  { %v1410_v53 = vadd.f32 %v1404_v50, %v3036_v60  ;;  %v1406_v62 = vadd.f32 %v1405_v52, %v1358_v37 }
 0xc9e   :  { %v1407_v0 = vpop.f32.mrf.mxu1 }
 0xc9f   :  { %v2254_v54 = vmul.f32 -1.442695, %v1410_v53  ;;  %v1411_v13 = vadd.f32 %v1406_v62, %v3039_v20 }
 0xca0   :  { %v1408_v55 = vpop.f32.mrf.mxu1 }
 0xca1   :  { %2527 = vpow2.f32 %v2254_v54  ;;  %v2255_v58 = vmul.f32 -1.442695, %v1411_v13 }
 0xca6   :  { %v1471_v57 = vpop.f32.mrf.mxu0 }
 0xca7   :  { %v1478_v61 = vadd.f32 %v2256_v56, %v1471_v57 }
 0xca8   :  { %v1473_v63 = vpop.f32.mrf.mxu0 }
 0xca9   :  { %v2259_v11 = vmul.f32 -1.442695, %v1478_v61  ;;  %v1479_v18 = vadd.f32 %v2257_v16, %v1473_v63 }
 0xcaa   :  { %v1475_v12 = vpop.f32.mrf.mxu0 }
 0xcab   :  { %2529 = vpow2.f32 %v2259_v11  ;;  %v2260_v42 = vmul.f32 -1.442695, %v1479_v18 }
 0xcac   :  { %v1476_v14 = vpop.f32.mrf.mxu0  ;;  %2531 = vtanh.f32 %v1411_v13 }
 0xcae   :  { %v2528_v23 = vpop.eup %2527 }
 0xcaf   :  { %v1415_v15 = vadd.f32 1.0, %v2528_v23 }
 0xcb1   :  { %2533 = vrcp.f32 %v1415_v15 }
 0xcb2   :  { %2535 = vtanh.f32 %v1479_v18 }
 0xcb8   :  { %v2530_v44 = vpop.eup %2529 }
 0xcb9   :  { %v1483_v4 = vadd.f32 1.0, %v2530_v44  ;;  %v2532_v19 = vpop.eup %2531 }
 0xcbb   :  { %2537 = vrcp.f32 %v1483_v4 }
 0xcbc   :  { %2539 = vpow2.f32 %v2255_v58 }
 0xcbd   :  { %2541 = vpow2.f32 %v2260_v42 }
 0xcbe   :  { %v2534_v21 = vpop.eup %2533 }
 0xcbf   :  { %v1426_v22 = vmul.f32 %v2534_v21, %v2532_v19  ;;  %v2536_v40 = vpop.eup %2535  ;;  %v1425_v5 = vmul.f32 %v2534_v21, %v3253_v17 }
 0xcc1   :  { %1428 = vrot.lane.b32.xlu0 %v1426_v22, %s2792_s26 }
 0xcc8   :  { %v2538_v3 = vpop.eup %2537 }
 0xcc9   :  { %v1494_v41 = vmul.f32 %v2538_v3, %v2536_v40  ;;  %v2540_v43 = vpop.eup %2539  ;;  %v1493_v50 = vmul.f32 %v2538_v3, %v3257_v45 }
 0xcca   :  { %v1422_v2 = vadd.f32 1.0, %v2540_v43  ;;  %v2542_v38 = vpop.eup %2541 }
 0xccb   :  { %1496 = vrot.lane.b32.xlu1 %v1494_v41, %s2792_s26  ;;  %v1490_v39 = vadd.f32 1.0, %v2542_v38 }
 0xccc   :  { %2543 = vrcp.f32 %v1422_v2 }
 0xcd9   :  { %v2544_v53 = vpop.eup %2543 }
 0xd33   :  { %v1429_v36 = vpop.permute.xlu0 %1428 }
 0xd34   :  { %v3342_v37 = vadd.f32 %v1429_v36, %v1425_v5  ;;  %v2793_v5 = vmov 0.0  }
 0xd36   :  { %2545 = vtanh.f32 %v3342_v37 }
 0xd37   :  { %2547 = vrcp.f32 %v1490_v39 }
 0xd3d   :  { %v1497_v51 = vpop.permute.xlu1 %1496 }
 0xd3e   :  { %v3346_v52 = vadd.f32 %v1497_v51, %v1493_v50 }
 0xd40   :  { %2549 = vtanh.f32 %v3346_v52 }
 0xd43   :  { %v2546_v0 = vpop.eup %2545 }
 0xd44   :  { %v1433_v54 = vmul.f32 %v2546_v0, %v2544_v53  ;;  %v2548_v55 = vpop.eup %2547 }
 0xd46   :  { %v1503_v17 = vpack.c.bf16 %v1433_v54, %v1433_v54 }
 0xd48   :  { %1505 = vrot.lane.b32.xlu0 %v1503_v17, %s2792_s26 }
 0xd4d   :  { %v2550_v56 = vpop.eup %2549 }
 0xd4e   :  { %v1501_v57 = vmul.f32 %v2550_v56, %v2548_v55  ;;  %v1810_v55 = vld [vmem:[#allocation3] sm:$0xff]  ;;  %v1901_v56 = vld [vmem:[%s3485_s8 + $0x18] sm:$0xff] }
 0xd50   :  { %v1502_v61 = vpack.c.bf16 %v1501_v57, %v1501_v57  ;;  %v1900_v57 = vld [vmem:[%s3485_s8 + $0x10] sm:$0xff] }
 0xd52   :  { %1552 = vrot.lane.b32.xlu1 %v1502_v61, %s2792_s26  ;;  %v1899_v61 = vld [vmem:[%s3485_s8 + $0x8] sm:$0xff] }
 0xdba   :  { %v1506_v62 = vpop.permute.xlu0 %1505 }
 0xdbb   :  { %2261 = vmatmul.mubr.msk.bf16.vlgmr.msra.gmra.mxu1 %vm216_vm0, %v1506_v62  ;;  %v1898_v62 = vld [vmem:[%s3485_s8] sm:$0xff] }
 0xdbc   :  { %1634 = vmatpush1.bf16.msra.mxu1 %v3207_v10  ;;  %1657 = vmatprep.mubr.bf16.mxu1 %v2791_v1 }
 0xdbd   :  { %1635 = vmatprep.subr.bf16.mxu1 %v3211_v59 }
 0xdc0   :  { %1636 = vmatpush1.bf16.msra.mxu1 %v3267_v46 }
 0xdc1   :  { %1637 = vmatprep.subr.bf16.mxu1 %v3273_v48 }
 0xdc4   :  { %1638 = vmatpush1.bf16.msra.mxu1 %v3280_v6  ;;  %v1553_v45 = vpop.permute.xlu1 %1552 }
 0xdc5   :  { %2262 = vmatmul.mubr.msk.bf16.vlgmr.msra.gmra.mxu0 %vm216_vm0, %v1553_v45  ;;  %1639 = vmatprep.subr.bf16.mxu1 %v3286_v8  ;;  %v2265_v8 = vld [vmem:[%s3477_s0 + $0x70] sm:$0xff] }
 0xdc6   :  { %1707 = vmatpush1.bf16.msra.mxu0 %v3270_v47  ;;  %1730 = vmatprep.mubr.bf16.mxu0 %v2791_v1 }
 0xdc7   :  { %1708 = vmatprep.subr.bf16.mxu0 %v3276_v49 }
 0xdc8   :  { %1640 = vmatpush1.bf16.msra.mxu1 %v3292_v25 }
 0xdc9   :  { %1753 = vmatprep.subr.bf16.mxu1 %v3298_v27 }
 0xdca   :  { %1709 = vmatpush1.bf16.msra.mxu0 %v3283_v7 }
 0xdcb   :  { %2267 = vmatmul.mubr.msk.bf16.vlgmr.msra.gmra.mxu1 %vm216_vm0, %v1553_v45  ;;  %1710 = vmatprep.subr.bf16.mxu0 %v3289_v9 }
 0xdcc   :  { %1754 = vmatpush1.bf16.msra.mxu1 %v3305_v29  ;;  %1777 = vmatprep.mubr.bf16.mxu1 %v2791_v1 }
 0xdcd   :  { %1755 = vmatprep.subr.bf16.mxu1 %v3311_v31 }
 0xdce   :  { %1711 = vmatpush1.bf16.msra.mxu0 %v3295_v26 }
 0xdcf   :  { %1712 = vmatprep.subr.bf16.mxu0 %v3301_v28 }
 0xdd0   :  { %1756 = vmatpush1.bf16.msra.mxu1 %v3316_v32 }
 0xdd1   :  { %1757 = vmatprep.subr.bf16.mxu1 %v3319_v33 }
 0xdd2   :  { %1713 = vmatpush1.bf16.msra.mxu0 %v3308_v30 }
 0xdd3   :  { %2303 = vmatprep.subr.mxu0 %v2793_v5 }
 0xdd4   :  { %1758 = vmatpush1.bf16.msra.mxu1 %v3322_v34  ;;  %v2266_v34 = vld [vmem:[%s3477_s0 + $0x78] sm:$0xff] }
 0xdd5   :  { %1759 = vmatprep.subr.bf16.mxu1 %v3325_v24 }
 0xdd8   :  { %1760 = vmatpush1.bf16.msra.mxu1 %v3328_v35 }
 0xdd9   :  { %2326 = vmatprep.subr.mxu1 %v2793_v5 }
 0xe7b   :  { %v1544_v10 = vpop.f32.mrf.mxu1 }
 0xe7d   :  { %v1546_v1 = vpop.f32.mrf.mxu1 }
 0xe7f   :  { %v1548_v59 = vpop.f32.mrf.mxu1 }
 0xe81   :  { %v1549_v46 = vpop.f32.mrf.mxu1 }
 0xe85   :  { %v1591_v47 = vpop.f32.mrf.mxu0 }
 0xe86   :  { %v1592_v48 = vadd.f32 %v1591_v47, %v1544_v10 }
 0xe87   :  { %v1593_v49 = vpop.f32.mrf.mxu0 }
 0xe88   :  { %v1598_v6 = vadd.f32 %v1592_v48, %v3036_v60  ;;  %v1594_v32 = vadd.f32 %v1593_v49, %v1546_v1  ;;  %v2274_v49 = vld [vmem:[#allocation13] ss:$0 sm:$0xff] }
 0xe89   :  { %v1595_v7 = vpop.f32.mrf.mxu0 }
 0xe8a   :  { %v2263_v9 = vmul.f32 -1.442695, %v1598_v6  ;;  %v1599_v33 = vadd.f32 %v1594_v32, %v3039_v20 }
 0xe8b   :  { %v1596_v25 = vpop.f32.mrf.mxu0  ;;  %v1659_v26 = vpop.f32.mrf.mxu1 }
 0xe8c   :  { %2551 = vpow2.f32 %v2263_v9  ;;  %v1666_v27 = vadd.f32 %v2265_v8, %v1659_v26  ;;  %v2264_v44 = vmul.f32 -1.442695, %v1599_v33 }
 0xe8d   :  { %v1661_v28 = vpop.f32.mrf.mxu1 }
 0xe8e   :  { %v2268_v29 = vmul.f32 -1.442695, %v1666_v27  ;;  %v1667_v63 = vadd.f32 %v2266_v34, %v1661_v28 }
 0xe8f   :  { %v1663_v30 = vpop.f32.mrf.mxu1 }
 0xe90   :  { %2553 = vpow2.f32 %v2268_v29  ;;  %v2269_v4 = vmul.f32 -1.442695, %v1667_v63 }
 0xe91   :  { %v1664_v31 = vpop.f32.mrf.mxu1  ;;  %2555 = vtanh.f32 %v1599_v33 }
 0xe99   :  { %v2552_v24 = vpop.eup %2551 }
 0xe9a   :  { %v1603_v35 = vadd.f32 1.0, %v2552_v24  ;;  %v1991_v24 = vld [vmem:[%s3487_s10 + $0x38] sm:$0xff] }
 0xe9c   :  { %2557 = vrcp.f32 %v1603_v35  ;;  %v1990_v35 = vld [vmem:[%s3487_s10 + $0x30] sm:$0xff] }
 0xe9d   :  { %v2554_v11 = vpop.eup %2553  ;;  %2559 = vtanh.f32 %v1667_v63  ;;  %v1988_v63 = vld [vmem:[%s3487_s10 + $0x20] sm:$0xff] }
 0xe9e   :  { %v1671_v12 = vadd.f32 1.0, %v2554_v11  ;;  %v2556_v13 = vpop.eup %2555  ;;  %v1987_v11 = vld [vmem:[%s3487_s10 + $0x18] sm:$0xff] }
 0xea0   :  { %2561 = vrcp.f32 %v1671_v12  ;;  %v1993_v12 = vld [vmem:[#allocation14 + $0x8] sm:$0xff] }
 0xea1   :  { %2563 = vpow2.f32 %v2264_v44 }
 0xea2   :  { %2565 = vpow2.f32 %v2269_v4 }
 0xea9   :  { %v2558_v14 = vpop.eup %2557 }
 0xeaa   :  { %v1614_v23 = vmul.f32 %v2558_v14, %v2556_v13  ;;  %v2560_v15 = vpop.eup %2559  ;;  %v1613_v40 = vmul.f32 %v2558_v14, %v3342_v37  ;;  %v1986_v13 = vld [vmem:[%s3487_s10 + $0x10] sm:$0xff] }
 0xeab   :  { %v1992_v14 = vld [vmem:[#allocation14] sm:$0xff] }
 0xeac   :  { %1616 = vrot.lane.b32.xlu0 %v1614_v23, %s2792_s26  ;;  %v1985_v23 = vld [vmem:[%s3487_s10 + $0x8] sm:$0xff] }
 0xead   :  { %v2562_v16 = vpop.eup %2561 }
 0xeae   :  { %v1682_v18 = vmul.f32 %v2562_v16, %v2560_v15  ;;  %v2564_v19 = vpop.eup %2563  ;;  %v1681_v42 = vmul.f32 %v2562_v16, %v3346_v52  ;;  %v1811_v52 = vld [vmem:[#allocation11] sm:$0x1f]  ;;  %v1984_v15 = vld [vmem:[%s3487_s10] sm:$0xff] }
 0xeaf   :  { %v1610_v21 = vadd.f32 1.0, %v2564_v19  ;;  %v2566_v22 = vpop.eup %2565 }
 0xeb0   :  { %1684 = vrot.lane.b32.xlu1 %v1682_v18, %s2792_s26  ;;  %v1678_v58 = vadd.f32 1.0, %v2566_v22 }
 0xeb1   :  { %2567 = vrcp.f32 %v1610_v21 }
 0xebe   :  { %v2568_v36 = vpop.eup %2567 }
 0xf1e   :  { %v1617_v3 = vpop.permute.xlu0 %1616 }
 0xf1f   :  { %v3390_v41 = vadd.f32 %v1617_v3, %v1613_v40 }
 0xf21   :  { %2569 = vtanh.f32 %v3390_v41 }
 0xf22   :  { %v1685_v43 = vpop.permute.xlu1 %1684  ;;  %2571 = vrcp.f32 %v1678_v58  ;;  %v2277_v58 = vld [vmem:[%s3486_s9] ss:$0 sm:$0xff] }
 0xf23   :  { %v1687_v2 = vadd.f32 %v1685_v43, %v1681_v42 }
 0xf25   :  { %2573 = vtanh.f32 %v1687_v2 }
 0xf2e   :  { %v2570_v37 = vpop.eup %2569 }
 0xf2f   :  { %v1621_v38 = vmul.f32 %v2570_v37, %v2568_v36  ;;  %v2572_v39 = vpop.eup %2571 }
 0xf31   :  { %v1691_v50 = vpack.c.bf16 %v1621_v38, %v1621_v38 }
 0xf32   :  { %v2574_v51 = vpop.eup %2573 }
 0xf33   :  { %1693 = vrot.lane.b32.xlu0 %v1691_v50, %s2792_s26  ;;  %v1689_v53 = vmul.f32 %v2574_v51, %v2572_v39  ;;  %v2281_v39 = vld [vmem:[%s3489_s12] ss:$0 sm:$0xff] }
 0xf35   :  { %v1690_v0 = vpack.c.bf16 %v1689_v53, %v1689_v53 }
 0xf37   :  { %1740 = vrot.lane.b32.xlu1 %v1690_v0, %s2792_s26  ;;  %v2282_v0 = vld [vmem:[%s3490_s13] ss:$0 sm:$0xff] }
 0xfa5   :  { %v1694_v54 = vpop.permute.xlu0 %1693 }
 0xfa6   :  { %2270 = vmatmul.mubr.msk.bf16.vlgmr.msra.gmra.mxu0 %vm216_vm0, %v1694_v54 }
 0xfa7   :  { %2304 = vmatpush3.msk.msra.mxu0 %vm1823_vm1, %v1811_v52  ;;  %2305 = vmatprep.mubr.msk.f32.mxu0 %vm2794_vm2, %v2793_v5 }
 0xfa8   :  { %2308 = vmatprep.subr.mxu0 %v2793_v5 }
 0xfa9   :  { %v1741_v17 = vpop.permute.xlu1 %1740 }
 0xfaa   :  { %2271 = vmatmul.mubr.msk.bf16.vlgmr.msra.gmra.mxu1 %vm216_vm0, %v1741_v17 }
 0xfab   :  { %2342 = vmatprep.mubr.msk.f32.mxu1 %vm2794_vm2, %v2793_v5  ;;  %2327 = vmatpush3.msra.mxu1 %v1991_v24 }
 0xfac   :  { %2328 = vmatprep.subr.mxu1 %v2793_v5 }
 0xfad   :  { %2329 = vmatpush3.msra.mxu1 %v1990_v35 }
 0xfae   :  { %2306 = vmatmul.mubr.msk.f32.vlgmr.msra.gmra.mxu0 %vm1819_vm3, %v1810_v55  ;;  %2330 = vmatprep.subr.mxu1 %v2793_v5  ;;  %v2283_v55 = vld [vmem:[#allocation2] ss:$0 sm:$0xff] }
 0xfaf   :  { %2316 = vmatprep.mubr.msk.f32.mxu0 %vm2794_vm2, %v2793_v5  ;;  %2309 = vmatpush3.msra.mxu0 %v1901_v56 }
 0xfb0   :  { %2310 = vmatprep.subr.mxu0 %v2793_v5 }
 0xfb1   :  { %2311 = vmatpush3.msra.mxu0 %v1900_v57 }
 0xfb2   :  { %2312 = vmatprep.subr.mxu0 %v2793_v5 }
 0xfb3   :  { %2313 = vmatpush3.msra.mxu0 %v1899_v61 }
 0xfb4   :  { %2314 = vmatprep.subr.mxu0 %v2793_v5 }
 0xfb5   :  { %2315 = vmatpush3.msra.mxu0 %v1898_v62 }
 0xfb6   :  { %2319 = vmatprep.subr.mxu0 %v2793_v5 }
0x1066   :  { %v1732_v45 = vpop.f32.mrf.mxu0 }
0x1068   :  { %v1734_v10 = vpop.f32.mrf.mxu0 }
0x106a   :  { %v1736_v1 = vpop.f32.mrf.mxu0  ;;  %v1779_v59 = vpop.f32.mrf.mxu1 }
0x106b   :  { %v1780_v46 = vadd.f32 %v1779_v59, %v1732_v45 }
0x106c   :  { %v1737_v47 = vpop.f32.mrf.mxu0  ;;  %v1781_v48 = vpop.f32.mrf.mxu1 }
0x106d   :  { %v1786_v6 = vadd.f32 %v1780_v46, %v3036_v60  ;;  %v1782_v29 = vadd.f32 %v1781_v48, %v1734_v10 }
0x106e   :  { %v1783_v7 = vpop.f32.mrf.mxu1  ;;  %v1893_v8 = vpop.f32.mrf.mxu0 }
0x106f   :  { %v2272_v9 = vmul.f32 -1.442695, %v1786_v6  ;;  %v1894_v25 = vadd.f32 %v2274_v49, %v1893_v8  ;;  %v1787_v30 = vadd.f32 %v1782_v29, %v3039_v20  ;;  %v1989_v20 = vld [vmem:[%s3487_s10 + $0x28] sm:$0xff] }
0x1070   :  { %v1784_v26 = vpop.f32.mrf.mxu1  ;;  %v2307_v27 = vpop.f32.mrf.mxu0  ;;  %2331 = vmatpush3.msra.mxu1 %v1989_v20 }
0x1071   :  { %2575 = vpow2.f32 %v2272_v9  ;;  %v1897_v28 = vmax.f32 %v1894_v25, 0.0  ;;  %2332 = vmatprep.subr.mxu1 %v2793_v5  ;;  %v2273_v16 = vmul.f32 -1.442695, %v1787_v30 }
0x1072   :  { %2577 = vtanh.f32 %v1787_v30  ;;  %2333 = vmatpush3.msra.mxu1 %v1988_v63 }
0x1073   :  { %2317 = vmatmul.mubr.msk.f32.vlgmr.msra.gmra.mxu0 %vm1909_vm4, %v1897_v28  ;;  %2334 = vmatprep.subr.mxu1 %v2793_v5 }
0x1074   :  { %2323 = vmatprep.mubr.msk.f32.mxu0 %vm2794_vm2, %v2793_v5  ;;  %2335 = vmatpush3.msra.mxu1 %v1987_v11 }
0x1075   :  { %2320 = vmatpush3.msra.mxu0 %v1993_v12  ;;  %2336 = vmatprep.subr.mxu1 %v2793_v5 }
0x1076   :  { %2321 = vmatprep.subr.mxu0 %v2793_v5  ;;  %2337 = vmatpush3.msra.mxu1 %v1986_v13 }
0x1077   :  { %2322 = vmatpush3.msra.mxu0 %v1992_v14  ;;  %2338 = vmatprep.subr.mxu1 %v2793_v5 }
0x1078   :  { %2339 = vmatpush3.msra.mxu1 %v1985_v23 }
0x1079   :  { %2340 = vmatprep.subr.mxu1 %v2793_v5 }
0x107a   :  { %2341 = vmatpush3.msra.mxu1 %v1984_v15 }
0x107e   :  { %v2576_v31 = vpop.eup %2575 }
0x107f   :  { %v1791_v32 = vadd.f32 1.0, %v2576_v31  ;;  %v2578_v60 = vpop.eup %2577 }
0x1081   :  { %2579 = vrcp.f32 %v1791_v32 }
0x1082   :  { %2581 = vpow2.f32 %v2273_v16 }
0x108e   :  { %v2580_v33 = vpop.eup %2579 }
0x108f   :  { %v1802_v34 = vmul.f32 %v2580_v33, %v2578_v60  ;;  %v2582_v18 = vpop.eup %2581  ;;  %v1801_v4 = vmul.f32 %v2580_v33, %v3390_v41 }
0x1090   :  { %v1798_v44 = vadd.f32 1.0, %v2582_v18 }
0x1091   :  { %1804 = vrot.lane.b32.xlu0 %v1802_v34, %s2792_s26 }
0x1092   :  { %2583 = vrcp.f32 %v1798_v44 }
0x109f   :  { %v2584_v22 = vpop.eup %2583 }
0x1103   :  { %v1805_v19 = vpop.permute.xlu0 %1804 }
0x1104   :  { %v1807_v21 = vadd.f32 %v1805_v19, %v1801_v4 }
0x1106   :  { %2585 = vtanh.f32 %v1807_v21 }
0x1113   :  { %v2586_v40 = vpop.eup %2585 }
0x1114   :  { %v1809_v3 = vmul.f32 %v2586_v40, %v2584_v22 }
0x1116   :  { %2069 = vrot.lane.b32.xlu1 %v1809_v3, %s2792_s26 }
0x1133   :  { %v1979_v42 = vpop.f32.mrf.mxu0 }
0x1134   :  { %v1980_v43 = vadd.f32 %v2277_v58, %v1979_v42 }
0x1135   :  { %v2318_v2 = vpop.f32.mrf.mxu0 }
0x1136   :  { %v1983_v5 = vmax.f32 %v1980_v43, 0.0 }
0x1138   :  { %2324 = vmatmul.mubr.msk.f32.vlgmr.msra.gmra.mxu0 %vm1994_vm5, %v1983_v5 }
0x1188   :  { %v2070_v41 = vpop.permute.xlu1 %2069 }
0x1189   :  { %2343 = vmatmul.mubr.msk.f32.vlgmr.msra.gmra.mxu1 %vm216_vm0, %v2070_v41 }
0x11f8   :  { %v2064_v36 = vpop.f32.mrf.mxu0 }
0x11fa   :  { %v2325_v37 = vpop.f32.mrf.mxu0 }
0x1249   :  { %v2139_v38 = vpop.f32.mrf.mxu1 }
0x124a   :  { %v2140_v50 = vadd.f32 %v2139_v38, %v2064_v36 }
0x124b   :  { %v2344_v51 = vpop.f32.mrf.mxu1 }
0x124c   :  { %v2150_v53 = vadd.f32 %v2281_v39, %v2140_v50 }
0x124e   :  { %v2151_v52 = vmax.f32 %v2150_v53, 0.0 }
0x1250   :  { %v2159_v54 = vmul.f32 %v2282_v0, %v2151_v52 }
0x1252   :  { %v2160_v17 = vsel %vm1909_vm4, %v2159_v54, 0.0 }
0x1253   :  { %2161 = vadd.xlane.f32.xlu0 %v2160_v17 }
0x12dc   :  { %v2162_v56 = vpop.xlane.xlu0 %2161 }
0x12dd   :  { %v2170_v57 = vadd.f32 %v2283_v55, %v2162_v56 }
0x12df   :  { %2172 = vst.msk [vmem:[%s3492_s15] sm:$0xff] %vm2171_vm6, %v2170_v57 }
0x12e0   :  { %2177 = vsyncpa [#allocation4], 1 }
0x12e1   :  { %2178 = vsyncpa [#allocation6], 1 }
0x12e2   :  { %2179 = vsyncpa [#allocation9], 1 }
0x12e3   :  { %2180 = vsyncpa [#allocation12], 1 }
0x12e4   :  { %2181 = vsyncpa [#allocation15], 1 }

</bundles_post_ra>
